<compile_context>
chip_gen: v7x
topology: tpu7x:2x2x1
jax: 0.10.0
libtpu: 0.0.40
codegen_flags: <defaults>
</compile_context>

<pallas_src>
import jax
import jax.numpy as jnp
from jax import lax
from jax.experimental import pallas as pl
from jax.experimental.pallas import tpu as pltpu


def _masked_attention_kernel(len_ref, h_ref, x_ref, w_ref, rep_ref, scores_ref):
    # len_ref: (B,) int32 in SMEM (scalar prefetch)
    # h_ref:   (bB, T, E) VMEM tile (native dtype)
    # x_ref:   (bB, T, D) VMEM tile (native dtype)
    # w_ref:   (1, E)     VMEM
    # rep_ref: (bB, D), scores_ref: (bB, T)
    bB, T, E = h_ref.shape
    b0 = pl.program_id(0) * bB

    h = h_ref[...]                                       # (bB, T, E)
    x = x_ref[...]                                       # (bB, T, D)
    w = w_ref[...].astype(h.dtype)                       # (1, E)

    # logits = h @ attention_weights on the MXU (batched, q == 1, f32 accum).
    wq = jnp.broadcast_to(w[None, :, :], (bB, 1, E))     # (bB, 1, E)
    logits = jnp.einsum(
        "bqe,bte->bqt", wq, h,
        preferred_element_type=jnp.float32)[:, 0, :]     # (bB, T) f32

    # Per-row max (cancels in the normalization; see header note).
    m = jnp.max(logits, axis=-1, keepdims=True)          # (bB, 1)

    # mask[r, t] = t < sequence_lengths[b0 + r]
    col = lax.broadcasted_iota(jnp.int32, (bB, T), 1)
    row = lax.broadcasted_iota(jnp.int32, (bB, T), 0)
    lens = jnp.zeros((bB, T), jnp.int32)
    for r in range(bB):                                  # static unroll, bB small
        lens = jnp.where(row == r, len_ref[b0 + r], lens)
    mask = col < lens                                    # (bB, T) bool

    # masked_scores = exp(logits - m) * mask  (mask fused into the exp)
    masked_scores = jnp.where(mask, jnp.exp(logits - m), 0.0)          # f32
    att_sums = jnp.maximum(
        jnp.sum(masked_scores, axis=-1, keepdims=True), 1e-5)          # clamp(min=1e-5)
    norm_scores = masked_scores / att_sums                             # (bB, T)

    # representations[b, :] = sum_t scores[b, t] * x[b, t, :]  on the MXU.
    rep = jnp.einsum(
        "bqt,btd->bqd", norm_scores[:, None, :].astype(x.dtype), x,
        preferred_element_type=jnp.float32)[:, 0, :]     # (bB, D) f32

    rep_ref[...] = rep.astype(rep_ref.dtype)
    scores_ref[...] = norm_scores.astype(scores_ref.dtype)


def _round_up(v, m):
    return ((v + m - 1) // m) * m


def masked_attention(h, x, sequence_lengths, attention_weights, *, block_b=None,
                     vmem_limit_bytes=None):
    """Pallas MaskedAttention forward.

    h: (B, T, E), x: (B, T, D), sequence_lengths: (B,) int, attention_weights: (E,).
    Returns (representations (B, D) in x.dtype, scores (B, T) f32).
    """
    B, T, E = h.shape
    D = x.shape[-1]
    assert x.shape[0] == B and x.shape[1] == T

    if block_b is None:
        # Size the batch tile so double-buffered h + x tiles stay well inside the
        # default scoped VMEM on every generation (v7x has only 64 MiB physical).
        bytes_per_row = T * (E * h.dtype.itemsize + D * x.dtype.itemsize)
        budget = 8 * 1024 * 1024
        block_b = max(8, min(64, (budget // max(1, 2 * bytes_per_row)) // 8 * 8))
    block_b = max(8, (block_b // 8) * 8)                 # sublane-aligned batch tile

    # Pad batch to a multiple of block_b; padded rows get length 0 (fully masked).
    Bp = _round_up(B, block_b)
    if Bp != B:
        pad = Bp - B
        h = jnp.pad(h, ((0, pad), (0, 0), (0, 0)))
        x = jnp.pad(x, ((0, pad), (0, 0), (0, 0)))
        sequence_lengths = jnp.pad(sequence_lengths, ((0, pad),))

    lens = sequence_lengths.astype(jnp.int32)            # (Bp,) -> SMEM via prefetch
    w2d = attention_weights.reshape(1, E)

    grid_spec = pltpu.PrefetchScalarGridSpec(
        num_scalar_prefetch=1,
        grid=(Bp // block_b,),
        in_specs=[
            pl.BlockSpec((block_b, T, E), lambda b, lens_ref: (b, 0, 0)),
            pl.BlockSpec((block_b, T, D), lambda b, lens_ref: (b, 0, 0)),
            pl.BlockSpec((1, E), lambda b, lens_ref: (0, 0)),
        ],
        out_specs=[
            pl.BlockSpec((block_b, D), lambda b, lens_ref: (b, 0)),
            pl.BlockSpec((block_b, T), lambda b, lens_ref: (b, 0)),
        ],
    )

    rep, scores = pl.pallas_call(
        _masked_attention_kernel,
        out_shape=(
            jax.ShapeDtypeStruct((Bp, D), x.dtype),      # representations
            jax.ShapeDtypeStruct((Bp, T), jnp.float32),  # scores
        ),
        grid_spec=grid_spec,
        compiler_params=pltpu.CompilerParams(
            dimension_semantics=("parallel",),
            vmem_limit_bytes=vmem_limit_bytes,
        ),
    )(lens, h, x, w2d)

    return rep[:B], scores[:B]


def masked_attention_ref(h, x, sequence_lengths, attention_weights):
    """Pure-JAX reference mirroring the PyTorch forward (global max, f32 math)."""
    h32 = h.astype(jnp.float32)
    x32 = x.astype(jnp.float32)
    w32 = attention_weights.astype(jnp.float32)
    logits = jnp.sum(h32 * w32[None, None, :], axis=-1)           # (B, T)
    scores = jnp.exp(logits - jnp.max(logits))                    # global max
    T = h.shape[1]
    idxes = jnp.arange(T)[None, :]
    mask = (idxes < sequence_lengths[:, None]).astype(jnp.float32)
    masked = scores * mask
    sums = jnp.maximum(jnp.sum(masked, axis=1, keepdims=True), 1e-5)
    scores = masked / sums
    weighted = x32 * scores[:, :, None]
    return jnp.sum(weighted, axis=1), scores


if __name__ == "__main__":
    # Small but (8,128)-aligned shapes: batch=16, seq=128, embedding=hidden=128.
    B, T, E = 16, 128, 128
    D = E

    key = jax.random.PRNGKey(0)
    k_h, k_x, k_w, k_l = jax.random.split(key, 4)

    h = jax.random.normal(k_h, (B, T, E), dtype=jnp.float32)
    x = jax.random.normal(k_x, (B, T, D), dtype=jnp.float32)
    # nn.Parameter(FloatTensor(embedding_size).uniform_(-0.1, 0.1))
    attention_weights = jax.random.uniform(
        k_w, (E,), dtype=jnp.float32, minval=-0.1, maxval=0.1)
    sequence_lengths = jax.random.randint(k_l, (B,), 1, T + 1).astype(jnp.int32)
    sequence_lengths = sequence_lengths.at[0].set(T).at[1].set(0)  # edge rows

    # block_b=8 -> grid of 2 steps, exercising the batch-tiled pipeline.
    rep, scores = masked_attention(h, x, sequence_lengths, attention_weights,
                                   block_b=8)
    rep, scores = jax.block_until_ready((rep, scores))

    rep_ref, scores_ref = masked_attention_ref(h, x, sequence_lengths,
                                               attention_weights)

    assert rep.shape == (B, D) and scores.shape == (B, T)
    # Tolerances absorb MXU precision for f32 matmuls while still catching any
    # masking / normalization error (wrong entries would be off by >= ~1/T).
    assert jnp.allclose(scores, scores_ref, atol=2e-3, rtol=2e-2), (
        "scores mismatch: max abs err = "
        f"{float(jnp.max(jnp.abs(scores - scores_ref)))}")
    assert jnp.allclose(rep, rep_ref, atol=2e-3, rtol=2e-2), (
        "representations mismatch: max abs err = "
        f"{float(jnp.max(jnp.abs(rep - rep_ref)))}")

    print("KERNEL_OK")
</pallas_src>

<mosaic_0001>
module attributes {stable_mosaic.version = 11 : i64} {
  func.func @_masked_attention_kernel(%arg0: i32, %arg1: memref<16xi32, #tpu.memory_space<smem>>, %arg2: memref<8x128x128xf32, #tpu.memory_space<vmem>>, %arg3: memref<8x128x128xf32, #tpu.memory_space<vmem>>, %arg4: memref<1x128xf32, #tpu.memory_space<vmem>>, %arg5: memref<8x128xf32, #tpu.memory_space<vmem>>, %arg6: memref<8x128xf32, #tpu.memory_space<vmem>>) attributes {dimension_semantics = [#tpu.dimension_semantics<parallel>], iteration_bounds = array<i64: 2>, scalar_prefetch = 1 : i64, scratch_operands = 0 : i64, tpu.core_type = #tpu.core_type<tc>, window_params = [{transform_indices = @transform_0, window_bounds = array<i64: 8, 128, 128>}, {transform_indices = @transform_1, window_bounds = array<i64: 8, 128, 128>}, {pipeline_mode = #tpu.pipeline_mode<synchronous>, transform_indices = @transform_2, window_bounds = array<i64: 1, 128>}, {transform_indices = @transform_3, window_bounds = array<i64: 8, 128>}, {transform_indices = @transform_4, window_bounds = array<i64: 8, 128>}]} {
    %c8_i32 = arith.constant 8 : i32
    %0 = arith.muli %arg0, %c8_i32 : i32
    %c0 = arith.constant 0 : index
    %c0_0 = arith.constant 0 : index
    %c0_1 = arith.constant 0 : index
    %1 = vector.load %arg2[%c0, %c0_0, %c0_1] : memref<8x128x128xf32, #tpu.memory_space<vmem>>, vector<8x128x128xf32>
    %c0_2 = arith.constant 0 : index
    %c0_3 = arith.constant 0 : index
    %c0_4 = arith.constant 0 : index
    %2 = vector.load %arg3[%c0_2, %c0_3, %c0_4] : memref<8x128x128xf32, #tpu.memory_space<vmem>>, vector<8x128x128xf32>
    %c0_5 = arith.constant 0 : index
    %c0_6 = arith.constant 0 : index
    %3 = vector.load %arg4[%c0_5, %c0_6] : memref<1x128xf32, #tpu.memory_space<vmem>>, vector<1x128xf32>
    %4 = vector.shape_cast %3 : vector<1x128xf32> to vector<1x1x128xf32>
    %5 = vector.shape_cast %4 : vector<1x1x128xf32> to vector<1x1x128xf32>
    %6 = vector.broadcast %5 : vector<1x1x128xf32> to vector<8x1x128xf32>
    "tpu.trace_start"() <{level = 10 : i32, message = "bqe,bte->bqt"}> : () -> ()
    %cst = arith.constant dense<0.000000e+00> : vector<8x1x128xf32>
    %7 = tpu.matmul %6, %1, %cst {dimension_numbers = #tpu.dot_dimension_numbers<[2], [2], [1], [1], [0, 0, 0, 1, 1, 1], [0], [0]>} : vector<8x1x128xf32>, vector<8x128x128xf32>, vector<8x1x128xf32> -> vector<8x1x128xf32>
    "tpu.trace_stop"() : () -> ()
    %8 = vector.shape_cast %7 : vector<8x1x128xf32> to vector<8x128xf32>
    %cst_7 = arith.constant dense<0xFF800000> : vector<8xf32>
    %9 = vector.multi_reduction <maximumf>, %8, %cst_7 [1] : vector<8x128xf32> to vector<8xf32>
    %10 = vector.shape_cast %9 : vector<8xf32> to vector<8x1xf32>
    %11 = tpu.iota {dimensions = array<i32: 1>} : vector<8x128xi32>
    %12 = tpu.iota {dimensions = array<i32: 0>} : vector<8x128xi32>
    %c0_i32 = arith.constant 0 : i32
    %13 = vector.broadcast %c0_i32 : i32 to vector<8x128xi32>
    %c0_i32_8 = arith.constant 0 : i32
    %14 = vector.broadcast %c0_i32_8 : i32 to vector<8x128xi32>
    %15 = arith.cmpi eq, %12, %14 : vector<8x128xi32>
    %c0_i32_9 = arith.constant 0 : i32
    %16 = arith.addi %0, %c0_i32_9 : i32
    %17 = arith.index_cast %16 : i32 to index
    %18 = memref.load %arg1[%17] : memref<16xi32, #tpu.memory_space<smem>>
    %19 = vector.broadcast %18 : i32 to vector<8x128xi32>
    %20 = arith.select %15, %19, %13 : vector<8x128xi1>, vector<8x128xi32>
    %c1_i32 = arith.constant 1 : i32
    %21 = vector.broadcast %c1_i32 : i32 to vector<8x128xi32>
    %22 = arith.cmpi eq, %12, %21 : vector<8x128xi32>
    %c1_i32_10 = arith.constant 1 : i32
    %23 = arith.addi %0, %c1_i32_10 : i32
    %24 = arith.index_cast %23 : i32 to index
    %25 = memref.load %arg1[%24] : memref<16xi32, #tpu.memory_space<smem>>
    %26 = vector.broadcast %25 : i32 to vector<8x128xi32>
    %27 = arith.select %22, %26, %20 : vector<8x128xi1>, vector<8x128xi32>
    %c2_i32 = arith.constant 2 : i32
    %28 = vector.broadcast %c2_i32 : i32 to vector<8x128xi32>
    %29 = arith.cmpi eq, %12, %28 : vector<8x128xi32>
    %c2_i32_11 = arith.constant 2 : i32
    %30 = arith.addi %0, %c2_i32_11 : i32
    %31 = arith.index_cast %30 : i32 to index
    %32 = memref.load %arg1[%31] : memref<16xi32, #tpu.memory_space<smem>>
    %33 = vector.broadcast %32 : i32 to vector<8x128xi32>
    %34 = arith.select %29, %33, %27 : vector<8x128xi1>, vector<8x128xi32>
    %c3_i32 = arith.constant 3 : i32
    %35 = vector.broadcast %c3_i32 : i32 to vector<8x128xi32>
    %36 = arith.cmpi eq, %12, %35 : vector<8x128xi32>
    %c3_i32_12 = arith.constant 3 : i32
    %37 = arith.addi %0, %c3_i32_12 : i32
    %38 = arith.index_cast %37 : i32 to index
    %39 = memref.load %arg1[%38] : memref<16xi32, #tpu.memory_space<smem>>
    %40 = vector.broadcast %39 : i32 to vector<8x128xi32>
    %41 = arith.select %36, %40, %34 : vector<8x128xi1>, vector<8x128xi32>
    %c4_i32 = arith.constant 4 : i32
    %42 = vector.broadcast %c4_i32 : i32 to vector<8x128xi32>
    %43 = arith.cmpi eq, %12, %42 : vector<8x128xi32>
    %c4_i32_13 = arith.constant 4 : i32
    %44 = arith.addi %0, %c4_i32_13 : i32
    %45 = arith.index_cast %44 : i32 to index
    %46 = memref.load %arg1[%45] : memref<16xi32, #tpu.memory_space<smem>>
    %47 = vector.broadcast %46 : i32 to vector<8x128xi32>
    %48 = arith.select %43, %47, %41 : vector<8x128xi1>, vector<8x128xi32>
    %c5_i32 = arith.constant 5 : i32
    %49 = vector.broadcast %c5_i32 : i32 to vector<8x128xi32>
    %50 = arith.cmpi eq, %12, %49 : vector<8x128xi32>
    %c5_i32_14 = arith.constant 5 : i32
    %51 = arith.addi %0, %c5_i32_14 : i32
    %52 = arith.index_cast %51 : i32 to index
    %53 = memref.load %arg1[%52] : memref<16xi32, #tpu.memory_space<smem>>
    %54 = vector.broadcast %53 : i32 to vector<8x128xi32>
    %55 = arith.select %50, %54, %48 : vector<8x128xi1>, vector<8x128xi32>
    %c6_i32 = arith.constant 6 : i32
    %56 = vector.broadcast %c6_i32 : i32 to vector<8x128xi32>
    %57 = arith.cmpi eq, %12, %56 : vector<8x128xi32>
    %c6_i32_15 = arith.constant 6 : i32
    %58 = arith.addi %0, %c6_i32_15 : i32
    %59 = arith.index_cast %58 : i32 to index
    %60 = memref.load %arg1[%59] : memref<16xi32, #tpu.memory_space<smem>>
    %61 = vector.broadcast %60 : i32 to vector<8x128xi32>
    %62 = arith.select %57, %61, %55 : vector<8x128xi1>, vector<8x128xi32>
    %c7_i32 = arith.constant 7 : i32
    %63 = vector.broadcast %c7_i32 : i32 to vector<8x128xi32>
    %64 = arith.cmpi eq, %12, %63 : vector<8x128xi32>
    %c7_i32_16 = arith.constant 7 : i32
    %65 = arith.addi %0, %c7_i32_16 : i32
    %66 = arith.index_cast %65 : i32 to index
    %67 = memref.load %arg1[%66] : memref<16xi32, #tpu.memory_space<smem>>
    %68 = vector.broadcast %67 : i32 to vector<8x128xi32>
    %69 = arith.select %64, %68, %62 : vector<8x128xi1>, vector<8x128xi32>
    %70 = arith.cmpi slt, %11, %69 : vector<8x128xi32>
    %71 = vector.broadcast %10 : vector<8x1xf32> to vector<8x128xf32>
    %72 = arith.subf %8, %71 : vector<8x128xf32>
    %73 = math.exp %72 : vector<8x128xf32>
    %cst_17 = arith.constant 0.000000e+00 : f32
    %74 = vector.broadcast %cst_17 : f32 to vector<8x128xf32>
    %75 = arith.select %70, %73, %74 : vector<8x128xi1>, vector<8x128xf32>
    %cst_18 = arith.constant dense<0.000000e+00> : vector<8xf32>
    %76 = vector.multi_reduction <add>, %75, %cst_18 [1] : vector<8x128xf32> to vector<8xf32>
    %77 = vector.shape_cast %76 : vector<8xf32> to vector<8x1xf32>
    %cst_19 = arith.constant 9.99999974E-6 : f32
    %78 = vector.broadcast %cst_19 : f32 to vector<8x1xf32>
    %79 = arith.maximumf %77, %78 : vector<8x1xf32>
    %80 = vector.broadcast %79 : vector<8x1xf32> to vector<8x128xf32>
    %81 = arith.divf %75, %80 : vector<8x128xf32>
    %82 = vector.shape_cast %81 : vector<8x128xf32> to vector<8x1x128xf32>
    "tpu.trace_start"() <{level = 10 : i32, message = "bqt,btd->bqd"}> : () -> ()
    %cst_20 = arith.constant dense<0.000000e+00> : vector<8x1x128xf32>
    %83 = tpu.matmul %82, %2, %cst_20 {dimension_numbers = #tpu.dot_dimension_numbers<[2], [1], [1], [2], [0, 0, 0, 1, 1, 2], [0], [0]>} : vector<8x1x128xf32>, vector<8x128x128xf32>, vector<8x1x128xf32> -> vector<8x1x128xf32>
    "tpu.trace_stop"() : () -> ()
    %84 = vector.shape_cast %83 : vector<8x1x128xf32> to vector<8x128xf32>
    %c0_21 = arith.constant 0 : index
    %c0_22 = arith.constant 0 : index
    %85 = vector.load %arg5[%c0_21, %c0_22] : memref<8x128xf32, #tpu.memory_space<vmem>>, vector<8x128xf32>
    tpu.vector_store %arg5[%c0_21, %c0_22], %84 {strides = array<i32>} : memref<8x128xf32, #tpu.memory_space<vmem>>, vector<8x128xf32>,
    %c0_23 = arith.constant 0 : index
    %c0_24 = arith.constant 0 : index
    %86 = vector.load %arg6[%c0_23, %c0_24] : memref<8x128xf32, #tpu.memory_space<vmem>>, vector<8x128xf32>
    tpu.vector_store %arg6[%c0_23, %c0_24], %81 {strides = array<i32>} : memref<8x128xf32, #tpu.memory_space<vmem>>, vector<8x128xf32>,
    return
  }
  func.func @transform_0(%arg0: i32, %arg1: memref<16xi32, #tpu.memory_space<smem>>) -> (i32, i32, i32) {
    %c0_i32 = arith.constant 0 : i32
    %c0_i32_0 = arith.constant 0 : i32
    %c0_i32_1 = arith.constant 0 : i32
    return %arg0, %c0_i32, %c0_i32_0 : i32, i32, i32
  }
  func.func @transform_1(%arg0: i32, %arg1: memref<16xi32, #tpu.memory_space<smem>>) -> (i32, i32, i32) {
    %c0_i32 = arith.constant 0 : i32
    %c0_i32_0 = arith.constant 0 : i32
    %c0_i32_1 = arith.constant 0 : i32
    return %arg0, %c0_i32, %c0_i32_0 : i32, i32, i32
  }
  func.func @transform_2(%arg0: i32, %arg1: memref<16xi32, #tpu.memory_space<smem>>) -> (i32, i32) {
    %c0_i32 = arith.constant 0 : i32
    %c0_i32_0 = arith.constant 0 : i32
    %c0_i32_1 = arith.constant 0 : i32
    return %c0_i32, %c0_i32_0 : i32, i32
  }
  func.func @transform_3(%arg0: i32, %arg1: memref<16xi32, #tpu.memory_space<smem>>) -> (i32, i32) {
    %c0_i32 = arith.constant 0 : i32
    %c0_i32_0 = arith.constant 0 : i32
    return %arg0, %c0_i32 : i32, i32
  }
  func.func @transform_4(%arg0: i32, %arg1: memref<16xi32, #tpu.memory_space<smem>>) -> (i32, i32) {
    %c0_i32 = arith.constant 0 : i32
    %c0_i32_0 = arith.constant 0 : i32
    return %arg0, %c0_i32 : i32, i32
  }
}

</mosaic_0001>

<bundles_post_ra>
// kernel: tpu_custom_call.1
= control target key start
LH: loop header
LB: loop body
LE: loop exit
PB: predicated region body
PF: predicated region fallthrough
CT: control target
= control target key end

     0   :  { %s4409_s0 = inlined_call_operand.hbm [shape: s32[16], index: 0, kind: input, shape index: {}]   ;;  %s4410_s1 = inlined_call_operand.hbm [shape: f32[16,128,128], index: 1, kind: input, shape index: {}]   ;;  %s4411_s2 = inlined_call_operand.hbm [shape: f32[16,128,128], index: 2, kind: input, shape index: {}]   ;;  %s4412_s3 = inlined_call_operand.vmem [shape: f32[1,128], index: 3, kind: input, shape index: {}]   ;;  %s4413_s4 = inlined_call_operand.hbm [shape: f32[16,128], index: 4, kind: output, shape index: {0}]   ;;  %s4414_s5 = inlined_call_operand.hbm [shape: f32[16,128], index: 5, kind: output, shape index: {1}]  }
   0x1   :  { %s3363_s20 = scalar_lea.hbm %s4409_s0, 16 }
   0x2   :  { %p3364_p0 = scmp.ne.s32.totalorder %s4409_s0, %s3363_s20  ;;  %p3367_p1 = scmp.lt.u32.totalorder %s3363_s20, %s4409_s0 }
   0x4   :  { %p3369_p2 = pnand %p3367_p1, %p3364_p0 }
   0x6   :  { %3372 = shalt.err (!%p3369_p2)  }
   0x7   :  { %s3539_s25 = smov [#allocation3]  }
   0x8   :  { %12 = dma.hbm_to_smem %s4409_s0, 16, %s3539_s25, [#allocation2] }
   0x9   :  { %3505 = dma.done.wait [#allocation2], 16 }
   0xa   :  { %3506 = vsyncadd [#allocation2], 4294967280 }
   0xb   :  { %14 = sfence }
   0xc   :  { %15 = vsyncpa [#allocation5], 0 }
   0xd   :  { %17 = vsyncpa [#allocation5 + $0x1], 0 }
   0xe   :  { %18 = vsyncpa [#allocation8], 0 }
   0xf   :  { %20 = vsyncpa [#allocation8 + $0x1], 0 }
  0x10   :  { %21 = vsyncpa [#allocation6], 0 }
  0x11   :  { %23 = vsyncpa [#allocation6 + $0x1], 0 }
  0x12   :  { %24 = vsyncpa [#allocation11], 0 }
  0x13   :  { %26 = vsyncpa [#allocation11 + $0x1], 0  ;;  %s3592_s28 = smov 0   ;;  %s3594_s29 = smov 0  }
  0x14   :  { %s3596_s30 = smov 0   ;;  %s3598_s6 = smov 0  }
  0x15 LB: > { %s3613_s0 = sadd.s32 4294967295, %s3537_s6   ;;  %s2039_s7 = sadd.s32 4294967294, %s3537_s6   ;;  %s3537_s6 = sphi %s3598_s6, %s4430_s6   ;;  %s3533_s30 = sphi %s3596_s30, %s4429_s30   ;;  %s3529_s29 = sphi %s3594_s29, %s4428_s29   ;;  %s3525_s28 = sphi %s3592_s28, %s4427_s28  }
  0x16   : > { %s3617_s8 = sadd.s32 1, %s3537_s6   ;;  %s39_s9 = sadd.s32 1, %s3533_s30 }
  0x17   : > { %s36_s10 = ssub.s32 %s3537_s6, %s3617_s8  ;;  %p46_p3 = scmp.ne.s32.totalorder %s3533_s30, %s3529_s29 }
  0x18   : > { %p37_p4 = scmp.eq.s32.totalorder %s36_s10, 0  ;;  %p47_p5 = scmp.eq.s32.totalorder %s3537_s6, 0 }
  0x19   : > { %p52_p6 = scmp.ne.s32.totalorder %s3529_s29, %s3525_s28  ;;  %p53_p7 = scmp.eq.s32.totalorder %s3613_s0, 0 }
  0x1a   : > { %s3629_s11 = scalar_select %p37_p4, %s3533_s30, %s39_s9  }
  0x1b   : > { %p3631_p8 = por %p47_p5, %p46_p3  ;;  %p3635_p9 = por %p53_p7, %p52_p6 }
  0x1c   : > { %p123_p10 = scmp.eq.s32.totalorder %s3613_s0, 1  ;;  %p129_p11 = scmp.eq.s32.totalorder %s2039_s7, 1 }
  0x1d   : > { %s4418_s13 = scalar_select %p3635_p9, 1, 0 }
  0x1e   : > { %p3304_p13 = scmp.lt.s32.totalorder %s3537_s6, 2  ;;  %p3642_p0 = por %p123_p10, %p46_p3 }
  0x1f   : > { %p3646_p1 = por %p129_p11, %p52_p6  ;;  %s3651_s16 = sand.u32 1, %s3533_s30  }
  0x20   : > { %s4419_s14 = scalar_select %p3642_p0, 1, 0 }
  0x21   : > { %s4420_s15 = scalar_select %p3646_p1, 1, 0 }
  0x22   : > { %s2063_s17 = sshll.u32 %s3537_s6, 14  ;;  %s2042_s18 = sshll.u32 %s3651_s16, 10 }
  0x23   : > { %s3660_s21 = scalar_lea.hbm %s4410_s1, %s2063_s17  ;;  %s182_s22 = scalar_lea.vmem [#allocation4], %s2042_s18 }
  0x24   : > { %s190_s23 = sshll.u32 %s182_s22, 4  ;;  %p3666_p2 = pnand %p3304_p13, %p3631_p8  ;;  %s3670_s23 = int_to_ptr.vmem [resolvable:$true] %s190_s23 }
  0x25   : > { %s179_s25 = scalar_lea.sflag [#allocation5], %s3651_s16  ;;  %s3373_s26 = scalar_lea.hbm %s3660_s21, 16384 }
  0x26   : > { %p3374_p3 = scmp.ne.s32.totalorder %s3660_s21, %s3373_s26  ;;  %p3375_p4 = pneg %p3666_p2 }
  0x27   : > { %s3378_s9 = scalar_lea.hbm %s4410_s1, 32768  ;;  %p3379_p7 = scmp.lt.u32.totalorder %s3660_s21, %s4410_s1 }
  0x28   : > { %p3376_p5 = pnand %p3375_p4, %p3374_p3  ;;  %p3380_p8 = scmp.lt.u32.totalorder %s3378_s9, %s3373_s26 }
  0x29   : > { %p3382_p11 = scmp.lt.u32.totalorder %s3373_s26, %s3660_s21 }
  0x2a   : > { %p3377_p6 = pneg %p3376_p5  ;;  %p3381_p10 = por %p3380_p8, %p3379_p7 }
  0x2c   : > { %p3383_p13 = por %p3382_p11, %p3381_p10 }
  0x2e   : > { %p3384_p12 = pnand %p3383_p13, %p3377_p6 }
  0x30   : > { %3387 = shalt.err (!%p3384_p12)
}
  0x31   : > { %s3388_s19 = scalar_lea.vmem %s3670_s23, 16384  ;;  %s3540_s20 = smov [#allocation4]  }
  0x32   : > { %p3389_p3 = scmp.ne.s32.totalorder %s3670_s23, %s3388_s19  ;;  %s3393_s22 = sshll.u32 %s3540_s20, 4  ;;  %s3394_s22 = int_to_ptr.vmem [resolvable:$false] %s3393_s22 }
  0x33   : > { %s3395_s27 = scalar_lea.vmem %s3394_s22, 32768  ;;  %p3396_p0 = scmp.lt.s32.totalorder %s3670_s23, %s3394_s22 }
  0x34   : > { %p3391_p5 = pnand %p3389_p3, %p3375_p4  ;;  %p3397_p7 = scmp.lt.s32.totalorder %s3395_s27, %s3388_s19 }
  0x36   : > { %p3392_p1 = pneg %p3391_p5  ;;  %p3398_p8 = por %p3397_p7, %p3396_p0 }
  0x38   : > { %p3399_p10 = pnand %p3398_p8, %p3392_p1 }
  0x3a   : > { %3402 = shalt.err (!%p3399_p10)
}
  0x3b   : > { %s3541_s26 = smov 128   ;;  %s3542_s7 = smov 8  }
  0x3c   : > { %3293 = dma.hbm_to_vmem [thread:$0]  (!%p3666_p2), %s3660_s21, 16384, %s3670_s23, %s179_s25, %s3541_s26, %s3541_s26, %s3542_s7  }
  0x3d   : > { %p2050_p12 = scmp.ge.s32.totalorder %s3537_s6, 1  ;;  %p220_p0 = scmp.lt.s32.totalorder %s3537_s6, 3 }
  0x3e   : > { %s3714_s19 = scalar_lea.hbm %s4411_s2, %s2063_s17  ;;  %s204_s20 = scalar_lea.vmem [#allocation7], %s2042_s18 }
  0x3f   : > { %p3705_p1 = pnand %p2050_p12, %p220_p0  ;;  %s212_s22 = sshll.u32 %s204_s20, 4  ;;  %s3718_s22 = int_to_ptr.vmem [resolvable:$true] %s212_s22 }
  0x40   : > { %s201_s21 = scalar_lea.sflag [#allocation8], %s3651_s16  ;;  %s3403_s23 = scalar_lea.hbm %s3714_s19, 16384 }
  0x41   : > { %p3404_p6 = scmp.ne.s32.totalorder %s3714_s19, %s3403_s23  ;;  %s3408_s17 = scalar_lea.hbm %s4411_s2, 32768 }
  0x42   : > { %p3409_p3 = scmp.lt.u32.totalorder %s3714_s19, %s4411_s2  ;;  %p3410_p5 = scmp.lt.u32.totalorder %s3408_s17, %s3403_s23 }
  0x43   : > { %p3406_p11 = pnand %p3404_p6, %p3375_p4  ;;  %p3412_p8 = scmp.lt.u32.totalorder %s3403_s23, %s3714_s19 }
  0x44   : > { %p3411_p7 = por %p3410_p5, %p3409_p3 }
  0x45   : > { %p3407_p13 = pneg %p3406_p11 }
  0x46   : > { %p3413_p10 = por %p3412_p8, %p3411_p7 }
  0x48   : > { %p3414_p12 = pnand %p3413_p10, %p3407_p13 }
  0x4a   : > { %3417 = shalt.err (!%p3414_p12)
}
  0x4b   : > { %s3418_s18 = scalar_lea.vmem %s3718_s22, 16384  ;;  %s3543_s20 = smov [#allocation7]  }
  0x4c   : > { %p3419_p0 = scmp.ne.s32.totalorder %s3718_s22, %s3418_s18  ;;  %s3423_s25 = sshll.u32 %s3543_s20, 4  ;;  %s3424_s25 = int_to_ptr.vmem [resolvable:$false] %s3423_s25 }
  0x4d   : > { %s3425_s27 = scalar_lea.vmem %s3424_s25, 32768  ;;  %p3426_p9 = scmp.lt.s32.totalorder %s3718_s22, %s3424_s25 }
  0x4e   : > { %p3421_p6 = pnand %p3419_p0, %p3375_p4  ;;  %p3427_p3 = scmp.lt.s32.totalorder %s3425_s27, %s3418_s18 }
  0x50   : > { %p3422_p11 = pneg %p3421_p6  ;;  %p3428_p5 = por %p3427_p3, %p3426_p9 }
  0x52   : > { %p3429_p7 = pnand %p3428_p5, %p3422_p11 }
  0x54   : > { %3432 = shalt.err (!%p3429_p7)
}
  0x55   : > { %3296 = dma.hbm_to_vmem [thread:$0]  (!%p3666_p2), %s3714_s19, 16384, %s3718_s22, %s201_s21, %s3541_s26, %s3541_s26, %s3542_s7  }
  0x56   : > { %224 = sbr.rel (%p3705_p1) target bundleno = 1227 (0x4cb), region = 32  ;;  %s3752_s23 = sand.u32 (!%p3705_p1), 1, %s3529_s29  }
  0x57   : > { %s2051_s17 = sshll.u32 (!%p3705_p1), %s3752_s23, 10  ;;  %s227_s10 = scalar_lea.sflag (!%p3705_p1), [#allocation5], %s3752_s23 }
  0x58   : > { %s3756_s24 = scalar_lea.vmem (!%p3705_p1), [#allocation4], %s2051_s17  ;;  %p4423_p9 = scmp.ne.s32.totalorder (!%p3705_p1), %s4418_s13, 0 }
  0x5d   : > { %3508 = dma.done.wait (%p4423_p9), %s227_s10, 16384  }
  0x5e   : > { %3510 = vsyncadd (%p4423_p9), %s227_s10, 4294950912  ;;  %s236_s16 = scalar_lea.sflag [#allocation8], %s3752_s23  ;;  %s3763_s26 = scalar_lea.vmem [#allocation7], %s2051_s17 }
  0x5f   : > { %3512 = dma.done.wait (%p4423_p9), %s236_s16, 16384  }
  0x60   : > { %3514 = vsyncadd (%p4423_p9), %s236_s16, 4294950912  ;;  %v3544_v0 = vmov 0.0|0.0   ;;  %vm3545_vm0 = vmmov 0   ;;  %v3546_v1 = vmov 0.0   ;;  %v277_v2 = vld [vmem:[%s3756_s24] sm:$0xff]  ;;  %v278_v3 = vld [vmem:[%s3756_s24 + $0x8] sm:$0xff] }
  0x61   : > { %2898 = vmatprep.subr.bf16.mxu0 %v3544_v0  ;;  %2922 = vmatprep.subr.bf16.mxu1 %v3544_v0  ;;  %v293_v4 = vld [vmem:[%s3756_s24 + $0x80] sm:$0xff]  ;;  %v2899_v5 = vpack.c.bf16 %v278_v3, %v277_v2  ;;  %v294_v6 = vld [vmem:[%s3756_s24 + $0x88] sm:$0xff]  ;;  %v279_v8 = vld [vmem:[%s3756_s24 + $0x10] sm:$0xff]  ;;  %vm1103_vm1 = vcmask 1041409   ;;  %vm1106_vm2 = vcmask 1042434   ;;  %vm1109_vm3 = vcmask 1043459  }
  0x62   : > { %2370 = vmatprep.mubr.msk.f32.mxu0 %vm3545_vm0, %v3546_v1  ;;  %2405 = vmatprep.mubr.msk.f32.mxu1 %vm3545_vm0, %v3546_v1  ;;  %v2923_v7 = vpack.c.bf16 %v294_v6, %v293_v4  ;;  %v280_v9 = vld [vmem:[%s3756_s24 + $0x18] sm:$0xff]  ;;  %v295_v10 = vld [vmem:[%s3756_s24 + $0x90] sm:$0xff]  ;;  %v281_v14 = vld [vmem:[%s3756_s24 + $0x20] sm:$0xff]  ;;  %vm1112_vm4 = vcmask 1044484   ;;  %vm1115_vm5 = vcmask 1045509   ;;  %vm1118_vm6 = vcmask 1046534  }
  0x63   : > { %2900 = vmatpush3.bf16.xpose.msra.mxu0 %v2899_v5  ;;  %v296_v11 = vld [vmem:[%s3756_s24 + $0x98] sm:$0xff]  ;;  %v2902_v12 = vpack.c.bf16 %v280_v9, %v279_v8  ;;  %v282_v15 = vld [vmem:[%s3756_s24 + $0x28] sm:$0xff]  ;;  %v297_v16 = vld [vmem:[%s3756_s24 + $0xa0] sm:$0xff]  ;;  %vm1121_vm7 = vcmask 1047559   ;;  %s4049_s9 = sshll.u32 %s3613_s0, 3  ;;  %p4424_p4 = scmp.ne.s32.totalorder %s4419_s14, 0 }
  0x64   : > { %2924 = vmatpush3.bf16.xpose.msra.mxu1 %v2923_v7  ;;  %2901 = vmatprep.subr.bf16.mxu0 %v3544_v0  ;;  %v2926_v13 = vpack.c.bf16 %v296_v11, %v295_v10  ;;  %v298_v17 = vld [vmem:[%s3756_s24 + $0xa8] sm:$0xff]  ;;  %v2905_v18 = vpack.c.bf16 %v282_v15, %v281_v14  ;;  %v283_v20 = vld [vmem:[%s3756_s24 + $0x30] sm:$0xff]  ;;  %v284_v21 = vld [vmem:[%s3756_s24 + $0x38] sm:$0xff]  ;;  %s1131_s19 = sld [smem:[#allocation3 + %s4049_s9]]  ;;  %s1135_s22 = sadd.s32 1, %s4049_s9 }
  0x65   : > { %2925 = vmatprep.subr.bf16.mxu1 %v3544_v0  ;;  %v2929_v19 = vpack.c.bf16 %v298_v17, %v297_v16  ;;  %v299_v22 = vld [vmem:[%s3756_s24 + $0xb0] sm:$0xff]  ;;  %v300_v23 = vld [vmem:[%s3756_s24 + $0xb8] sm:$0xff]  ;;  %v2908_v24 = vpack.c.bf16 %v284_v21, %v283_v20  ;;  %v285_v26 = vld [vmem:[%s3756_s24 + $0x40] sm:$0xff]  ;;  %s1136_s21 = sld [smem:[#allocation3 + %s1135_s22]]  ;;  %s1140_s12 = sadd.s32 2, %s4049_s9 }
  0x66   : > { %v2932_v25 = vpack.c.bf16 %v300_v23, %v299_v22  ;;  %v286_v27 = vld [vmem:[%s3756_s24 + $0x48] sm:$0xff]  ;;  %v301_v28 = vld [vmem:[%s3756_s24 + $0xc0] sm:$0xff]  ;;  %v287_v32 = vld [vmem:[%s3756_s24 + $0x50] sm:$0xff]  ;;  %s4057_s18 = sld [smem:[#allocation3 + %s1140_s12]]  ;;  %s1145_s20 = sadd.s32 3, %s4049_s9 }
  0x67   : > { %v302_v29 = vld [vmem:[%s3756_s24 + $0xc8] sm:$0xff]  ;;  %v2911_v30 = vpack.c.bf16 %v286_v27, %v285_v26  ;;  %v288_v33 = vld [vmem:[%s3756_s24 + $0x58] sm:$0xff]  ;;  %v303_v34 = vld [vmem:[%s3756_s24 + $0xd0] sm:$0xff]  ;;  %s4062_s25 = sld [smem:[#allocation3 + %s1145_s20]]  ;;  %s1150_s27 = sadd.s32 4, %s4049_s9 }
  0x68   : > { %v2935_v31 = vpack.c.bf16 %v302_v29, %v301_v28  ;;  %v304_v35 = vld [vmem:[%s3756_s24 + $0xd8] sm:$0xff]  ;;  %v2914_v36 = vpack.c.bf16 %v288_v33, %v287_v32  ;;  %v289_v38 = vld [vmem:[%s3756_s24 + $0x60] sm:$0xff]  ;;  %v290_v39 = vld [vmem:[%s3756_s24 + $0x68] sm:$0xff]  ;;  %s4068_s17 = sld [smem:[#allocation3 + %s1150_s27]]  ;;  %s1155_s10 = sadd.s32 5, %s4049_s9 }
  0x69   : > { %v2938_v37 = vpack.c.bf16 %v304_v35, %v303_v34  ;;  %v305_v40 = vld [vmem:[%s3756_s24 + $0xe0] sm:$0xff]  ;;  %v306_v41 = vld [vmem:[%s3756_s24 + $0xe8] sm:$0xff]  ;;  %v2917_v42 = vpack.c.bf16 %v290_v39, %v289_v38  ;;  %v291_v44 = vld [vmem:[%s3756_s24 + $0x70] sm:$0xff]  ;;  %s1160_s16 = sadd.s32 6, %s4049_s9  ;;  %s1165_s7 = sadd.s32 7, %s4049_s9 }
  0x6a   : > { %v2941_v43 = vpack.c.bf16 %v306_v41, %v305_v40  ;;  %v292_v45 = vld [vmem:[%s3756_s24 + $0x78] sm:$0xff]  ;;  %v307_v46 = vld [vmem:[%s3756_s24 + $0xf0] sm:$0xff]  ;;  %v309_v50 = vld [vmem:[%s3756_s24 + $0x100] sm:$0xff]  ;;  %s1161_s13 = sld [smem:[#allocation3 + %s1160_s16]]  ;;  %s2053_s9 = sshll.u32 %s3752_s23, 3 }
  0x6b   : > { %2903 = vmatpush3.bf16.xpose.msra.mxu0 %v2902_v12  ;;  %v308_v47 = vld [vmem:[%s3756_s24 + $0xf8] sm:$0xff]  ;;  %v2920_v48 = vpack.c.bf16 %v292_v45, %v291_v44  ;;  %v310_v51 = vld [vmem:[%s3756_s24 + $0x108] sm:$0xff]  ;;  %v325_v52 = vld [vmem:[%s3756_s24 + $0x180] sm:$0xff]  ;;  %s4143_s22 = scalar_lea.vmem [#allocation10], %s2053_s9 }
  0x6c   : > { %2927 = vmatpush3.bf16.xpose.msra.mxu1 %v2926_v13  ;;  %2904 = vmatprep.subr.bf16.mxu0 %v3544_v0  ;;  %v2944_v49 = vpack.c.bf16 %v308_v47, %v307_v46  ;;  %v326_v53 = vld [vmem:[%s3756_s24 + $0x188] sm:$0xff]  ;;  %v3830_v54 = vld [vmem:[%s4412_s3] sm:$0x1]  ;;  %v2947_v55 = vpack.c.bf16 %v310_v51, %v309_v50  ;;  %v311_v57 = vld [vmem:[%s3756_s24 + $0x110] sm:$0xff]  ;;  %s1914_s20 = sshll.u32 %s4143_s22, 4  ;;  %s1915_s20 = int_to_ptr.vmem [resolvable:$true] %s1914_s20 }
  0x6d   : > { %2928 = vmatprep.subr.bf16.mxu1 %v3544_v0  ;;  %v2971_v56 = vpack.c.bf16 %v326_v53, %v325_v52  ;;  %v312_v58 = vld [vmem:[%s3756_s24 + $0x118] sm:$0xff]  ;;  %v327_v59 = vld [vmem:[%s3756_s24 + $0x190] sm:$0xff]  ;;  %v313_v63 = vld [vmem:[%s3756_s24 + $0x120] sm:$0xff]  ;;  %s3433_s27 = scalar_lea.vmem %s1915_s20, 128 }
  0x6e   : > { %v328_v60 = vld [vmem:[%s3756_s24 + $0x198] sm:$0xff]  ;;  %v2950_v61 = vpack.c.bf16 %v312_v58, %v311_v57  ;;  %v314_v2 = vld [vmem:[%s3756_s24 + $0x128] sm:$0xff]  ;;  %v329_v3 = vld [vmem:[%s3756_s24 + $0x1a0] sm:$0xff]  ;;  %p3434_p2 = scmp.ne.s32.totalorder %s1915_s20, %s3433_s27 }
  0x6f   : > { %v2974_v62 = vpack.c.bf16 %v328_v60, %v327_v59  ;;  %v330_v4 = vld [vmem:[%s3756_s24 + $0x1a8] sm:$0xff]  ;;  %v2953_v5 = vpack.c.bf16 %v314_v2, %v313_v63  ;;  %v315_v7 = vld [vmem:[%s3756_s24 + $0x130] sm:$0xff]  ;;  %v316_v8 = vld [vmem:[%s3756_s24 + $0x138] sm:$0xff] }
  0x70   : > { %v2977_v6 = vpack.c.bf16 %v330_v4, %v329_v3  ;;  %v331_v9 = vld [vmem:[%s3756_s24 + $0x1b0] sm:$0xff]  ;;  %v332_v10 = vld [vmem:[%s3756_s24 + $0x1b8] sm:$0xff]  ;;  %v2956_v11 = vpack.c.bf16 %v316_v8, %v315_v7  ;;  %v317_v13 = vld [vmem:[%s3756_s24 + $0x140] sm:$0xff]  ;;  %p3435_p1 = pnand %p3434_p2, %p4424_p4 }
  0x71   : > { %v2980_v12 = vpack.c.bf16 %v332_v10, %v331_v9  ;;  %v318_v14 = vld [vmem:[%s3756_s24 + $0x148] sm:$0xff]  ;;  %v333_v15 = vld [vmem:[%s3756_s24 + $0x1c0] sm:$0xff]  ;;  %v320_v20 = vld [vmem:[%s3756_s24 + $0x158] sm:$0xff] }
  0x72   : > { %v334_v16 = vld [vmem:[%s3756_s24 + $0x1c8] sm:$0xff]  ;;  %v2959_v17 = vpack.c.bf16 %v318_v14, %v317_v13  ;;  %v335_v21 = vld [vmem:[%s3756_s24 + $0x1d0] sm:$0xff]  ;;  %v336_v22 = vld [vmem:[%s3756_s24 + $0x1d8] sm:$0xff]  ;;  %p3436_p13 = pneg %p3435_p1 }
  0x73   : > { %2906 = vmatpush3.bf16.xpose.msra.mxu0 %v2905_v18  ;;  %v2983_v18 = vpack.c.bf16 %v334_v16, %v333_v15  ;;  %v322_v26 = vld [vmem:[%s3756_s24 + $0x168] sm:$0xff]  ;;  %v337_v27 = vld [vmem:[%s3756_s24 + $0x1e0] sm:$0xff]  ;;  %v324_v32 = vld [vmem:[%s3756_s24 + $0x178] sm:$0xff] }
  0x74   : > { %2930 = vmatpush3.bf16.xpose.msra.mxu1 %v2929_v19  ;;  %2907 = vmatprep.subr.bf16.mxu0 %v3544_v0  ;;  %v319_v19 = vld [vmem:[%s3756_s24 + $0x150] sm:$0xff]  ;;  %v338_v28 = vld [vmem:[%s3756_s24 + $0x1e8] sm:$0xff]  ;;  %v340_v34 = vld [vmem:[%s3756_s24 + $0x1f8] sm:$0xff] }
  0x75   : > { %2931 = vmatprep.subr.bf16.mxu1 %v3544_v0  ;;  %v2962_v23 = vpack.c.bf16 %v320_v20, %v319_v19  ;;  %v339_v33 = vld [vmem:[%s3756_s24 + $0x1f0] sm:$0xff]  ;;  %v342_v38 = vld [vmem:[%s3756_s24 + $0x208] sm:$0xff]  ;;  %v357_v39 = vld [vmem:[%s3756_s24 + $0x280] sm:$0xff] }
  0x76   : > { %v358_v40 = vld [vmem:[%s3756_s24 + $0x288] sm:$0xff]  ;;  %v344_v44 = vld [vmem:[%s3756_s24 + $0x218] sm:$0xff]  ;;  %v359_v45 = vld [vmem:[%s3756_s24 + $0x290] sm:$0xff] }
  0x77   : > { %v360_v46 = vld [vmem:[%s3756_s24 + $0x298] sm:$0xff]  ;;  %v346_v50 = vld [vmem:[%s3756_s24 + $0x228] sm:$0xff]  ;;  %v361_v51 = vld [vmem:[%s3756_s24 + $0x2a0] sm:$0xff] }
  0x78   : > { %v362_v52 = vld [vmem:[%s3756_s24 + $0x2a8] sm:$0xff]  ;;  %v348_v57 = vld [vmem:[%s3756_s24 + $0x238] sm:$0xff]  ;;  %v363_v58 = vld [vmem:[%s3756_s24 + $0x2b0] sm:$0xff] }
  0x79   : > { %v364_v59 = vld [vmem:[%s3756_s24 + $0x2b8] sm:$0xff]  ;;  %v350_v63 = vld [vmem:[%s3756_s24 + $0x248] sm:$0xff]  ;;  %v365_v2 = vld [vmem:[%s3756_s24 + $0x2c0] sm:$0xff] }
  0x7a   : > { %v366_v3 = vld [vmem:[%s3756_s24 + $0x2c8] sm:$0xff]  ;;  %v352_v7 = vld [vmem:[%s3756_s24 + $0x258] sm:$0xff]  ;;  %v367_v8 = vld [vmem:[%s3756_s24 + $0x2d0] sm:$0xff] }
  0x7b   : > { %2909 = vmatpush3.bf16.xpose.msra.mxu0 %v2908_v24  ;;  %v2986_v24 = vpack.c.bf16 %v336_v22, %v335_v21  ;;  %v368_v9 = vld [vmem:[%s3756_s24 + $0x2d8] sm:$0xff]  ;;  %v354_v13 = vld [vmem:[%s3756_s24 + $0x268] sm:$0xff]  ;;  %v369_v14 = vld [vmem:[%s3756_s24 + $0x2e0] sm:$0xff] }
  0x7c   : > { %2933 = vmatpush3.bf16.xpose.msra.mxu1 %v2932_v25  ;;  %2910 = vmatprep.subr.bf16.mxu0 %v3544_v0  ;;  %v321_v25 = vld [vmem:[%s3756_s24 + $0x160] sm:$0xff]  ;;  %v370_v15 = vld [vmem:[%s3756_s24 + $0x2e8] sm:$0xff]  ;;  %v356_v19 = vld [vmem:[%s3756_s24 + $0x278] sm:$0xff] }
  0x7d   : > { %2934 = vmatprep.subr.bf16.mxu1 %v3544_v0  ;;  %v2965_v29 = vpack.c.bf16 %v322_v26, %v321_v25  ;;  %v371_v20 = vld [vmem:[%s3756_s24 + $0x2f0] sm:$0xff]  ;;  %v372_v21 = vld [vmem:[%s3756_s24 + $0x2f8] sm:$0xff]  ;;  %v374_v25 = vld [vmem:[%s3756_s24 + $0x308] sm:$0xff] }
  0x7e   : > { %v389_v26 = vld [vmem:[%s3756_s24 + $0x380] sm:$0xff] }
  0x83   : > { %2912 = vmatpush3.bf16.xpose.msra.mxu0 %v2911_v30  ;;  %v2989_v30 = vpack.c.bf16 %v338_v28, %v337_v27  ;;  %v390_v27 = vld [vmem:[%s3756_s24 + $0x388] sm:$0xff] }
  0x84   : > { %2936 = vmatpush3.bf16.xpose.msra.mxu1 %v2935_v31  ;;  %2913 = vmatprep.subr.bf16.mxu0 %v3544_v0  ;;  %v323_v31 = vld [vmem:[%s3756_s24 + $0x170] sm:$0xff] }
  0x85   : > { %2937 = vmatprep.subr.bf16.mxu1 %v3544_v0  ;;  %v2968_v35 = vpack.c.bf16 %v324_v32, %v323_v31  ;;  %v376_v31 = vld [vmem:[%s3756_s24 + $0x318] sm:$0xff]  ;;  %v391_v32 = vld [vmem:[%s3756_s24 + $0x390] sm:$0xff] }
  0x8b   : > { %2915 = vmatpush3.bf16.xpose.msra.mxu0 %v2914_v36  ;;  %v2992_v36 = vpack.c.bf16 %v340_v34, %v339_v33  ;;  %v392_v33 = vld [vmem:[%s3756_s24 + $0x398] sm:$0xff] }
  0x8c   : > { %2939 = vmatpush3.bf16.xpose.msra.mxu1 %v2938_v37  ;;  %2916 = vmatprep.subr.bf16.mxu0 %v3544_v0  ;;  %v341_v37 = vld [vmem:[%s3756_s24 + $0x200] sm:$0xff] }
  0x8d   : > { %2940 = vmatprep.subr.bf16.mxu1 %v3544_v0  ;;  %v2995_v41 = vpack.c.bf16 %v342_v38, %v341_v37  ;;  %v378_v37 = vld [vmem:[%s3756_s24 + $0x328] sm:$0xff]  ;;  %v393_v38 = vld [vmem:[%s3756_s24 + $0x3a0] sm:$0xff] }
  0x93   : > { %2918 = vmatpush3.bf16.xpose.msra.mxu0 %v2917_v42  ;;  %v3019_v42 = vpack.c.bf16 %v358_v40, %v357_v39  ;;  %v394_v39 = vld [vmem:[%s3756_s24 + $0x3a8] sm:$0xff] }
  0x94   : > { %2942 = vmatpush3.bf16.xpose.msra.mxu1 %v2941_v43  ;;  %2919 = vmatprep.subr.bf16.mxu0 %v3544_v0  ;;  %v343_v43 = vld [vmem:[%s3756_s24 + $0x210] sm:$0xff] }
  0x95   : > { %2943 = vmatprep.subr.bf16.mxu1 %v3544_v0  ;;  %v2998_v47 = vpack.c.bf16 %v344_v44, %v343_v43  ;;  %v380_v43 = vld [vmem:[%s3756_s24 + $0x338] sm:$0xff]  ;;  %v395_v44 = vld [vmem:[%s3756_s24 + $0x3b0] sm:$0xff] }
  0x9b   : > { %2921 = vmatpush3.bf16.xpose.msra.mxu0 %v2920_v48  ;;  %v3022_v48 = vpack.c.bf16 %v360_v46, %v359_v45  ;;  %v396_v45 = vld [vmem:[%s3756_s24 + $0x3b8] sm:$0xff] }
  0x9c   : > { %2945 = vmatpush3.bf16.xpose.msra.mxu1 %v2944_v49  ;;  %2946 = vmatprep.subr.bf16.mxu0 %v3544_v0  ;;  %v345_v49 = vld [vmem:[%s3756_s24 + $0x220] sm:$0xff] }
  0x9d   : > { %2970 = vmatprep.subr.bf16.mxu1 %v3544_v0  ;;  %v3001_v53 = vpack.c.bf16 %v346_v50, %v345_v49  ;;  %v382_v49 = vld [vmem:[%s3756_s24 + $0x348] sm:$0xff]  ;;  %v397_v50 = vld [vmem:[%s3756_s24 + $0x3c0] sm:$0xff] }
  0xa2   : > { %2371 = vmatmul.mubr.f32.vlgmr.msra.gmra.mrb[0].mxu0 %v3830_v54 }
  0xa3   : > { %2406 = vmatmul.mubr.f32.vlgmr.msra.gmra.mrb[0].mxu1 %v3830_v54  ;;  %2948 = vmatpush3.bf16.xpose.msra.mxu0 %v2947_v55  ;;  %v3025_v55 = vpack.c.bf16 %v362_v52, %v361_v51  ;;  %v398_v51 = vld [vmem:[%s3756_s24 + $0x3c8] sm:$0xff] }
  0xa4   : > { %2972 = vmatpush3.bf16.xpose.msra.mxu1 %v2971_v56  ;;  %2949 = vmatprep.subr.bf16.mxu0 %v3544_v0  ;;  %v347_v56 = vld [vmem:[%s3756_s24 + $0x230] sm:$0xff] }
  0xa5   : > { %2973 = vmatprep.subr.bf16.mxu1 %v3544_v0  ;;  %2440 = vmatprep.mubr.msk.f32.mxu0 %vm3545_vm0, %v3546_v1  ;;  %v3004_v60 = vpack.c.bf16 %v348_v57, %v347_v56  ;;  %v384_v56 = vld [vmem:[%s3756_s24 + $0x358] sm:$0xff]  ;;  %v399_v57 = vld [vmem:[%s3756_s24 + $0x3d0] sm:$0xff] }
  0xa6   : > { %2475 = vmatprep.mubr.msk.f32.mxu1 %vm3545_vm0, %v3546_v1 }
  0xab   : > { %2951 = vmatpush3.bf16.xpose.msra.mxu0 %v2950_v61  ;;  %v3028_v61 = vpack.c.bf16 %v364_v59, %v363_v58  ;;  %v400_v58 = vld [vmem:[%s3756_s24 + $0x3d8] sm:$0xff] }
  0xac   : > { %2975 = vmatpush3.bf16.xpose.msra.mxu1 %v2974_v62  ;;  %2952 = vmatprep.subr.bf16.mxu0 %v3544_v0  ;;  %v349_v62 = vld [vmem:[%s3756_s24 + $0x240] sm:$0xff] }
  0xad   : > { %2976 = vmatprep.subr.bf16.mxu1 %v3544_v0  ;;  %v3007_v4 = vpack.c.bf16 %v350_v63, %v349_v62  ;;  %v386_v62 = vld [vmem:[%s3756_s24 + $0x368] sm:$0xff]  ;;  %v401_v63 = vld [vmem:[%s3756_s24 + $0x3e0] sm:$0xff] }
  0xb3   : > { %2954 = vmatpush3.bf16.xpose.msra.mxu0 %v2953_v5  ;;  %v3031_v5 = vpack.c.bf16 %v366_v3, %v365_v2  ;;  %v402_v2 = vld [vmem:[%s3756_s24 + $0x3e8] sm:$0xff] }
  0xb4   : > { %2978 = vmatpush3.bf16.xpose.msra.mxu1 %v2977_v6  ;;  %2955 = vmatprep.subr.bf16.mxu0 %v3544_v0  ;;  %v351_v6 = vld [vmem:[%s3756_s24 + $0x250] sm:$0xff] }
  0xb5   : > { %2979 = vmatprep.subr.bf16.mxu1 %v3544_v0  ;;  %v3010_v10 = vpack.c.bf16 %v352_v7, %v351_v6  ;;  %v388_v6 = vld [vmem:[%s3756_s24 + $0x378] sm:$0xff]  ;;  %v403_v7 = vld [vmem:[%s3756_s24 + $0x3f0] sm:$0xff] }
  0xbb   : > { %2957 = vmatpush3.bf16.xpose.msra.mxu0 %v2956_v11  ;;  %v3034_v11 = vpack.c.bf16 %v368_v9, %v367_v8  ;;  %v404_v8 = vld [vmem:[%s3756_s24 + $0x3f8] sm:$0xff] }
  0xbc   : > { %2981 = vmatpush3.bf16.xpose.msra.mxu1 %v2980_v12  ;;  %2958 = vmatprep.subr.bf16.mxu0 %v3544_v0  ;;  %v353_v12 = vld [vmem:[%s3756_s24 + $0x260] sm:$0xff] }
  0xbd   : > { %2982 = vmatprep.subr.bf16.mxu1 %v3544_v0  ;;  %v3013_v16 = vpack.c.bf16 %v354_v13, %v353_v12 }
  0xc3   : > { %2960 = vmatpush3.bf16.xpose.msra.mxu0 %v2959_v17  ;;  %v3037_v17 = vpack.c.bf16 %v370_v15, %v369_v14 }
  0xc4   : > { %2984 = vmatpush3.bf16.xpose.msra.mxu1 %v2983_v18  ;;  %2961 = vmatprep.subr.bf16.mxu0 %v3544_v0  ;;  %v355_v18 = vld [vmem:[%s3756_s24 + $0x270] sm:$0xff] }
  0xc5   : > { %2985 = vmatprep.subr.bf16.mxu1 %v3544_v0  ;;  %v3016_v22 = vpack.c.bf16 %v356_v19, %v355_v18 }
  0xcb   : > { %2963 = vmatpush3.bf16.xpose.msra.mxu0 %v2962_v23  ;;  %v3040_v23 = vpack.c.bf16 %v372_v21, %v371_v20 }
  0xcc   : > { %2987 = vmatpush3.bf16.xpose.msra.mxu1 %v2986_v24  ;;  %2964 = vmatprep.subr.bf16.mxu0 %v3544_v0  ;;  %v373_v24 = vld [vmem:[%s3756_s24 + $0x300] sm:$0xff] }
  0xcd   : > { %2988 = vmatprep.subr.bf16.mxu1 %v3544_v0  ;;  %v3043_v28 = vpack.c.bf16 %v374_v25, %v373_v24 }
  0xd3   : > { %2966 = vmatpush3.bf16.xpose.msra.mxu0 %v2965_v29  ;;  %v3067_v29 = vpack.c.bf16 %v390_v27, %v389_v26 }
  0xd4   : > { %2990 = vmatpush3.bf16.xpose.msra.mxu1 %v2989_v30  ;;  %2967 = vmatprep.subr.bf16.mxu0 %v3544_v0  ;;  %v375_v30 = vld [vmem:[%s3756_s24 + $0x310] sm:$0xff] }
  0xd5   : > { %2991 = vmatprep.subr.bf16.mxu1 %v3544_v0  ;;  %v3046_v34 = vpack.c.bf16 %v376_v31, %v375_v30 }
  0xdb   : > { %2969 = vmatpush3.bf16.xpose.msra.mxu0 %v2968_v35  ;;  %v3070_v35 = vpack.c.bf16 %v392_v33, %v391_v32 }
  0xdc   : > { %2993 = vmatpush3.bf16.xpose.msra.mxu1 %v2992_v36  ;;  %2994 = vmatprep.subr.bf16.mxu0 %v3544_v0  ;;  %v377_v36 = vld [vmem:[%s3756_s24 + $0x320] sm:$0xff] }
  0xdd   : > { %3018 = vmatprep.subr.bf16.mxu1 %v3544_v0  ;;  %v3049_v40 = vpack.c.bf16 %v378_v37, %v377_v36 }
  0xe2   : > { %2441 = vmatmul.mubr.f32.vlgmr.msra.gmra.mrb[2].mxu0 %v3830_v54 }
  0xe3   : > { %2476 = vmatmul.mubr.f32.vlgmr.msra.gmra.mrb[2].mxu1 %v3830_v54  ;;  %2996 = vmatpush3.bf16.xpose.msra.mxu0 %v2995_v41  ;;  %v3073_v41 = vpack.c.bf16 %v394_v39, %v393_v38 }
  0xe4   : > { %3020 = vmatpush3.bf16.xpose.msra.mxu1 %v3019_v42  ;;  %2997 = vmatprep.subr.bf16.mxu0 %v3544_v0  ;;  %v379_v42 = vld [vmem:[%s3756_s24 + $0x330] sm:$0xff] }
  0xe5   : > { %3021 = vmatprep.subr.bf16.mxu1 %v3544_v0  ;;  %2510 = vmatprep.mubr.msk.f32.mxu0 %vm3545_vm0, %v3546_v1  ;;  %v3052_v46 = vpack.c.bf16 %v380_v43, %v379_v42  ;;  %v421_v42 = vld [vmem:[%s3763_s26 + $0x80] sm:$0xff] }
  0xe6   : > { %2545 = vmatprep.mubr.msk.f32.mxu1 %vm3545_vm0, %v3546_v1 }
  0xeb   : > { %2999 = vmatpush3.bf16.xpose.msra.mxu0 %v2998_v47  ;;  %v3076_v47 = vpack.c.bf16 %v396_v45, %v395_v44  ;;  %v422_v44 = vld [vmem:[%s3763_s26 + $0x88] sm:$0xff]  ;;  %v407_v45 = vld [vmem:[%s3763_s26 + $0x10] sm:$0xff] }
  0xec   : > { %3023 = vmatpush3.bf16.xpose.msra.mxu1 %v3022_v48  ;;  %3000 = vmatprep.subr.bf16.mxu0 %v3544_v0  ;;  %v381_v48 = vld [vmem:[%s3756_s24 + $0x340] sm:$0xff] }
  0xed   : > { %3024 = vmatprep.subr.bf16.mxu1 %v3544_v0  ;;  %v3055_v52 = vpack.c.bf16 %v382_v49, %v381_v48  ;;  %v423_v48 = vld [vmem:[%s3763_s26 + $0x90] sm:$0xff]  ;;  %v424_v49 = vld [vmem:[%s3763_s26 + $0x98] sm:$0xff] }
  0xf3   : > { %3002 = vmatpush3.bf16.xpose.msra.mxu0 %v3001_v53  ;;  %v3079_v53 = vpack.c.bf16 %v398_v51, %v397_v50  ;;  %v3118_v51 = vpack.c.bf16 %v424_v49, %v423_v48 }
  0xf4   : > { %3026 = vmatpush3.bf16.xpose.msra.mxu1 %v3025_v55  ;;  %3003 = vmatprep.subr.bf16.mxu0 %v3544_v0  ;;  %v383_v55 = vld [vmem:[%s3756_s24 + $0x350] sm:$0xff] }
  0xf5   : > { %3027 = vmatprep.subr.bf16.mxu1 %v3544_v0  ;;  %v3058_v59 = vpack.c.bf16 %v384_v56, %v383_v55  ;;  %v425_v55 = vld [vmem:[%s3763_s26 + $0xa0] sm:$0xff]  ;;  %v426_v56 = vld [vmem:[%s3763_s26 + $0xa8] sm:$0xff] }
  0xfb   : > { %3005 = vmatpush3.bf16.xpose.msra.mxu0 %v3004_v60  ;;  %v3082_v60 = vpack.c.bf16 %v400_v58, %v399_v57  ;;  %v3121_v58 = vpack.c.bf16 %v426_v56, %v425_v55 }
  0xfc   : > { %3029 = vmatpush3.bf16.xpose.msra.mxu1 %v3028_v61  ;;  %3006 = vmatprep.subr.bf16.mxu0 %v3544_v0  ;;  %v385_v61 = vld [vmem:[%s3756_s24 + $0x360] sm:$0xff] }
  0xfd   : > { %3030 = vmatprep.subr.bf16.mxu1 %v3544_v0  ;;  %v3061_v3 = vpack.c.bf16 %v386_v62, %v385_v61  ;;  %v1126_v62 = vlaneseq }
 0x103   : > { %3008 = vmatpush3.bf16.xpose.msra.mxu0 %v3007_v4  ;;  %v3085_v4 = vpack.c.bf16 %v402_v2, %v401_v63  ;;  %v4055_v63 = vshrl.u32 %v1126_v62, 7  ;;  %v1132_v2 = vstv %s1131_s19  ;;  %s1166_s19 = sld [smem:[#allocation3 + %s1165_s7]] }
 0x104   : > { %3032 = vmatpush3.bf16.xpose.msra.mxu1 %v3031_v5  ;;  %3009 = vmatprep.subr.bf16.mxu0 %v3544_v0  ;;  %v387_v5 = vld [vmem:[%s3756_s24 + $0x370] sm:$0xff]  ;;  %s4075_s24 = sld [smem:[#allocation3 + %s1155_s10]] }
 0x105   : > { %3033 = vmatprep.subr.bf16.mxu1 %v3544_v0  ;;  %v3064_v9 = vpack.c.bf16 %v388_v6, %v387_v5  ;;  %vm1130_vm8 = vcmp.eq.s32.totalorder %v4055_v63, 0  ;;  %vm1134_vm9 = vcmp.eq.s32.totalorder %v4055_v63, 1  ;;  %vm1139_vm10 = vcmp.eq.s32.totalorder %v4055_v63, 2 }
 0x106   : > { %vm1144_vm11 = vcmp.eq.s32.totalorder %v4055_v63, 3  ;;  %vm1149_vm12 = vcmp.eq.s32.totalorder %v4055_v63, 4  ;;  %vm1154_vm13 = vcmp.eq.s32.totalorder %v4055_v63, 5  ;;  %vm1159_vm14 = vcmp.eq.s32.totalorder %v4055_v63, 6 }
 0x107   : > { %vm1164_vm15 = vcmp.eq.s32.totalorder %v4055_v63, 7 }
 0x10b   : > { %3011 = vmatpush3.bf16.xpose.msra.mxu0 %v3010_v10  ;;  %v3088_v10 = vpack.c.bf16 %v404_v8, %v403_v7  ;;  %v1142_v7 = vstv %s4057_s18 }
 0x10c   : > { %3035 = vmatpush3.bf16.xpose.msra.mxu1 %v3034_v11  ;;  %3012 = vmatprep.subr.bf16.mxu0 %v3544_v0 }
 0x10d   : > { %3036 = vmatprep.subr.bf16.mxu1 %v3544_v0 }
 0x113   : > { %3014 = vmatpush3.bf16.xpose.msra.mxu0 %v3013_v16 }
 0x114   : > { %3038 = vmatpush3.bf16.xpose.msra.mxu1 %v3037_v17  ;;  %3015 = vmatprep.subr.bf16.mxu0 %v3544_v0 }
 0x115   : > { %3039 = vmatprep.subr.bf16.mxu1 %v3544_v0 }
 0x11b   : > { %3017 = vmatpush3.bf16.xpose.msra.mxu0 %v3016_v22 }
 0x11c   : > { %3041 = vmatpush3.bf16.xpose.msra.mxu1 %v3040_v23  ;;  %3042 = vmatprep.subr.bf16.mxu0 %v3544_v0 }
 0x11d   : > { %3066 = vmatprep.subr.bf16.mxu1 %v3544_v0 }
 0x122   : > { %2511 = vmatmul.mubr.f32.vlgmr.msra.gmra.mrb[4].mxu0 %v3830_v54 }
 0x123   : > { %2546 = vmatmul.mubr.f32.vlgmr.msra.gmra.mrb[4].mxu1 %v3830_v54  ;;  %3044 = vmatpush3.bf16.xpose.msra.mxu0 %v3043_v28 }
 0x124   : > { %3068 = vmatpush3.bf16.xpose.msra.mxu1 %v3067_v29  ;;  %3045 = vmatprep.subr.bf16.mxu0 %v3544_v0 }
 0x125   : > { %3069 = vmatprep.subr.bf16.mxu1 %v3544_v0  ;;  %2580 = vmatprep.mubr.msk.f32.mxu0 %vm3545_vm0, %v3546_v1 }
 0x126   : > { %2615 = vmatprep.mubr.msk.f32.mxu1 %vm3545_vm0, %v3546_v1 }
 0x12b   : > { %3047 = vmatpush3.bf16.xpose.msra.mxu0 %v3046_v34 }
 0x12c   : > { %3071 = vmatpush3.bf16.xpose.msra.mxu1 %v3070_v35  ;;  %3048 = vmatprep.subr.bf16.mxu0 %v3544_v0 }
 0x12d   : > { %3072 = vmatprep.subr.bf16.mxu1 %v3544_v0 }
 0x133   : > { %3050 = vmatpush3.bf16.xpose.msra.mxu0 %v3049_v40  ;;  %v405_v40 = vld [vmem:[%s3763_s26] sm:$0xff] }
 0x134   : > { %3074 = vmatpush3.bf16.xpose.msra.mxu1 %v3073_v41  ;;  %3051 = vmatprep.subr.bf16.mxu0 %v3544_v0  ;;  %v406_v41 = vld [vmem:[%s3763_s26 + $0x8] sm:$0xff] }
 0x135   : > { %3075 = vmatprep.subr.bf16.mxu1 %v3544_v0  ;;  %v3091_v43 = vpack.c.bf16 %v406_v41, %v405_v40 }
 0x13b   : > { %3053 = vmatpush3.bf16.xpose.msra.mxu0 %v3052_v46  ;;  %v408_v46 = vld [vmem:[%s3763_s26 + $0x18] sm:$0xff] }
 0x13c   : > { %3077 = vmatpush3.bf16.xpose.msra.mxu1 %v3076_v47  ;;  %3054 = vmatprep.subr.bf16.mxu0 %v3544_v0  ;;  %v3115_v47 = vpack.c.bf16 %v422_v44, %v421_v42  ;;  %v3094_v50 = vpack.c.bf16 %v408_v46, %v407_v45  ;;  %v1167_v42 = vstv %s1166_s19 }
 0x13d   : > { %3078 = vmatprep.subr.bf16.mxu1 %v3544_v0 }
 0x143   : > { %3056 = vmatpush3.bf16.xpose.msra.mxu0 %v3055_v52  ;;  %v409_v52 = vld [vmem:[%s3763_s26 + $0x20] sm:$0xff] }
 0x144   : > { %3080 = vmatpush3.bf16.xpose.msra.mxu1 %v3079_v53  ;;  %3057 = vmatprep.subr.bf16.mxu0 %v3544_v0  ;;  %v410_v53 = vld [vmem:[%s3763_s26 + $0x28] sm:$0xff] }
 0x145   : > { %3081 = vmatprep.subr.bf16.mxu1 %v3544_v0  ;;  %v3097_v57 = vpack.c.bf16 %v410_v53, %v409_v52 }
 0x14b   : > { %3059 = vmatpush3.bf16.xpose.msra.mxu0 %v3058_v59  ;;  %v411_v59 = vld [vmem:[%s3763_s26 + $0x30] sm:$0xff] }
 0x14c   : > { %3083 = vmatpush3.bf16.xpose.msra.mxu1 %v3082_v60  ;;  %3060 = vmatprep.subr.bf16.mxu0 %v3544_v0  ;;  %v412_v60 = vld [vmem:[%s3763_s26 + $0x38] sm:$0xff] }
 0x14d   : > { %3084 = vmatprep.subr.bf16.mxu1 %v3544_v0  ;;  %v3100_v61 = vpack.c.bf16 %v412_v60, %v411_v59 }
 0x153   : > { %3062 = vmatpush3.bf16.xpose.msra.mxu0 %v3061_v3  ;;  %v1133_v3 = vsel %vm1130_vm8, %v1132_v2, 0 }
 0x154   : > { %3086 = vmatpush3.bf16.xpose.msra.mxu1 %v3085_v4  ;;  %3063 = vmatprep.subr.bf16.mxu0 %v3544_v0  ;;  %v1137_v4 = vstv %s1136_s21 }
 0x155   : > { %3087 = vmatprep.subr.bf16.mxu1 %v3544_v0  ;;  %v1138_v6 = vsel %vm1134_vm9, %v1137_v4, %v1133_v3 }
 0x15b   : > { %3065 = vmatpush3.bf16.xpose.msra.mxu0 %v3064_v9 }
 0x15c   : > { %3089 = vmatpush3.bf16.xpose.msra.mxu1 %v3088_v10  ;;  %3090 = vmatprep.subr.bf16.mxu0 %v3544_v0 }
 0x15d   : > { %3114 = vmatprep.subr.bf16.mxu1 %v3544_v0 }
 0x162   : > { %2581 = vmatmul.mubr.f32.vlgmr.msra.gmra.mrb[6].mxu0 %v3830_v54 }
 0x163   : > { %2616 = vmatmul.mubr.f32.vlgmr.msra.gmra.mrb[6].mxu1 %v3830_v54  ;;  %2650 = vmatprep.mubr.msk.f32.mxu0 %vm3545_vm0, %v3546_v1 }
 0x164   : > { %2685 = vmatprep.mubr.msk.f32.mxu1 %vm3545_vm0, %v3546_v1  ;;  %3092 = vmatpush3.bf16.msra.mxu0 %v3091_v43 }
 0x165   : > { %3116 = vmatpush3.bf16.msra.mxu1 %v3115_v47  ;;  %3093 = vmatprep.subr.bf16.mxu0 %v3544_v0  ;;  %v1127_v47 = vand.u32 127, %v1126_v62 }
 0x166   : > { %3117 = vmatprep.subr.bf16.mxu1 %v3544_v0 }
 0x168   : > { %3095 = vmatpush3.bf16.msra.mxu0 %v3094_v50 }
 0x169   : > { %3119 = vmatpush3.bf16.msra.mxu1 %v3118_v51  ;;  %3096 = vmatprep.subr.bf16.mxu0 %v3544_v0 }
 0x16a   : > { %3120 = vmatprep.subr.bf16.mxu1 %v3544_v0 }
 0x16c   : > { %3098 = vmatpush3.bf16.msra.mxu0 %v3097_v57 }
 0x16d   : > { %3122 = vmatpush3.bf16.msra.mxu1 %v3121_v58  ;;  %3099 = vmatprep.subr.bf16.mxu0 %v3544_v0 }
 0x16e   : > { %3123 = vmatprep.subr.bf16.mxu1 %v3544_v0 }
 0x170   : > { %3101 = vmatpush3.bf16.msra.mxu0 %v3100_v61 }
 0x171   : > { %3102 = vmatprep.subr.bf16.mxu0 %v3544_v0 }
 0x175   : > { %v3996_v11 = vpop.f32.mrb[0].mxu0 }
 0x176   : > { %v3998_v12 = vpop.f32.mrb[0].mxu1  ;;  %v2372_v13 = vpop.f32.mrb[1].mxu0 }
 0x177   : > { %v1102_v14 = vrot.slane %v3998_v12, 7  ;;  %v2407_v15 = vpop.f32.mrb[1].mxu1 }
 0x179   : > { %v1104_v16 = vsel %vm1103_vm1, %v1102_v14, %v3996_v11 }
 0x1b5   : > { %v4003_v17 = vpop.f32.mrb[2].mxu0 }
 0x1b6   : > { %v1105_v54 = vrot.slane %v4003_v17, 6  ;;  %v2442_v18 = vpop.f32.mrb[3].mxu0  ;;  %v4006_v19 = vpop.f32.mrb[2].mxu1 }
 0x1b7   : > { %v1108_v20 = vrot.slane %v4006_v19, 5  ;;  %v2477_v21 = vpop.f32.mrb[3].mxu1 }
 0x1b8   : > { %v1107_v22 = vsel %vm1106_vm2, %v1105_v54, %v1104_v16 }
 0x1b9   : > { %v1110_v23 = vsel %vm1109_vm3, %v1108_v20, %v1107_v22 }
 0x1f5   : > { %v4011_v24 = vpop.f32.mrb[4].mxu0 }
 0x1f6   : > { %v1111_v25 = vrot.slane %v4011_v24, 4  ;;  %v2512_v26 = vpop.f32.mrb[5].mxu0  ;;  %v4014_v27 = vpop.f32.mrb[4].mxu1 }
 0x1f7   : > { %v1114_v28 = vrot.slane %v4014_v27, 3  ;;  %v2547_v29 = vpop.f32.mrb[5].mxu1 }
 0x1f8   : > { %v1113_v30 = vsel %vm1112_vm4, %v1111_v25, %v1110_v23  ;;  %v1147_v29 = vstv %s4062_s25  ;;  %s1888_s25 = scalar_lea.sflag [#allocation11], %s3752_s23 }
 0x1f9   : > { %v1116_v31 = vsel %vm1115_vm5, %v1114_v28, %v1113_v30 }
 0x235   : > { %v4019_v32 = vpop.f32.mrb[6].mxu0 }
 0x236   : > { %v1117_v33 = vrot.slane %v4019_v32, 2  ;;  %v4022_v34 = vpop.f32.mrb[6].mxu1  ;;  %v2582_v35 = vpop.f32.mrb[7].mxu0 }
 0x237   : > { %v1120_v36 = vrot.slane %v4022_v34, 1  ;;  %v2617_v37 = vpop.f32.mrb[7].mxu1  ;;  %v1157_v35 = vstv %s4075_s24 }
 0x238   : > { %v1119_v38 = vsel %vm1118_vm6, %v1117_v33, %v1116_v31  ;;  %v1162_v37 = vstv %s1161_s13 }
 0x239   : > { %v1122_v39 = vsel %vm1121_vm7, %v1120_v36, %v1119_v38 }
 0x23a   : > { %1124 = vmax.xlane.f32.xlu0 %v1122_v39 }
 0x2c7   : > { %v1125_v5 = vpop.xlane.xlu0 %1124 }
 0x2c8   : > { %v1171_v8 = vrot.slane %v1125_v5, 1  ;;  %v1172_v9 = vrot.slane %v1125_v5, 2  ;;  %v1173_v10 = vrot.slane %v1125_v5, 3  ;;  %v1186_v13 = vsub.f32 %v3996_v11, %v1125_v5 }
 0x2c9   : > { %v1174_v14 = vrot.slane %v1125_v5, 4  ;;  %v1175_v15 = vrot.slane %v1125_v5, 5  ;;  %v1176_v16 = vrot.slane %v1125_v5, 6  ;;  %v1177_v54 = vrot.slane %v1125_v5, 7  ;;  %v427_v5 = vld [vmem:[%s3763_s26 + $0xb0] sm:$0xff] }
 0x2ca   : > { %v1187_v18 = vsub.f32 %v3998_v12, %v1171_v8  ;;  %v1194_v20 = vmul.f32 1.442695, %v1186_v13  ;;  %v1188_v21 = vsub.f32 %v4003_v17, %v1172_v9  ;;  %v1189_v22 = vsub.f32 %v4006_v19, %v1173_v10  ;;  %v413_v8 = vld [vmem:[%s3763_s26 + $0x40] sm:$0xff]  ;;  %v414_v9 = vld [vmem:[%s3763_s26 + $0x48] sm:$0xff] }
 0x2cb   : > { %v1190_v11 = vsub.f32 %v4011_v24, %v1174_v14  ;;  %v1191_v23 = vsub.f32 %v4014_v27, %v1175_v15  ;;  %v1192_v25 = vsub.f32 %v4019_v32, %v1176_v16  ;;  %v1193_v12 = vsub.f32 %v4022_v34, %v1177_v54  ;;  %v429_v13 = vld [vmem:[%s3763_s26 + $0xc0] sm:$0xff]  ;;  %v430_v14 = vld [vmem:[%s3763_s26 + $0xc8] sm:$0xff]  ;;  %v415_v16 = vld [vmem:[%s3763_s26 + $0x50] sm:$0xff] }
 0x2cc   : > { %v1196_v26 = vmul.f32 1.442695, %v1187_v18  ;;  %v1198_v28 = vmul.f32 1.442695, %v1188_v21  ;;  %v1200_v17 = vmul.f32 1.442695, %v1189_v22  ;;  %3345 = vpow2.f32 %v1194_v20 }
 0x2cd   : > { %v1143_v19 = vsel %vm1139_vm10, %v1142_v7, %v1138_v6  ;;  %v1202_v30 = vmul.f32 1.442695, %v1190_v11  ;;  %v1204_v24 = vmul.f32 1.442695, %v1191_v23  ;;  %v1206_v27 = vmul.f32 1.442695, %v1192_v25 }
 0x2ce   : > { %3347 = vpow2.f32 %v1196_v26  ;;  %v1148_v31 = vsel %vm1144_vm11, %v1147_v29, %v1143_v19  ;;  %v1152_v32 = vstv %s4068_s17  ;;  %v1208_v33 = vmul.f32 1.442695, %v1193_v12  ;;  %v428_v6 = vld [vmem:[%s3763_s26 + $0xb8] sm:$0xff]  ;;  %v431_v20 = vld [vmem:[%s3763_s26 + $0xd0] sm:$0xff]  ;;  %v417_v11 = vld [vmem:[%s3763_s26 + $0x60] sm:$0xff]  ;;  %s3548_s17 = smov [#allocation10]  }
 0x2cf   : > { %3349 = vpow2.f32 %v1198_v28  ;;  %v1153_v34 = vsel %vm1149_vm12, %v1152_v32, %v1148_v31  ;;  %v3124_v7 = vpack.c.bf16 %v428_v6, %v427_v5  ;;  %v3103_v10 = vpack.c.bf16 %v414_v9, %v413_v8  ;;  %v416_v54 = vld [vmem:[%s3763_s26 + $0x58] sm:$0xff]  ;;  %v418_v23 = vld [vmem:[%s3763_s26 + $0x68] sm:$0xff]  ;;  %v433_v25 = vld [vmem:[%s3763_s26 + $0xe0] sm:$0xff]  ;;  %s3437_s10 = sshll.u32 %s3548_s17, 4  ;;  %s3438_s10 = int_to_ptr.vmem [resolvable:$false] %s3437_s10 }
 0x2d0   : > { %3351 = vpow2.f32 %v1200_v17  ;;  %v1158_v36 = vsel %vm1154_vm13, %v1157_v35, %v1153_v34  ;;  %v3127_v15 = vpack.c.bf16 %v430_v14, %v429_v13  ;;  %v3106_v18 = vpack.c.bf16 %v416_v54, %v415_v16  ;;  %v432_v21 = vld [vmem:[%s3763_s26 + $0xd8] sm:$0xff]  ;;  %v434_v12 = vld [vmem:[%s3763_s26 + $0xe8] sm:$0xff]  ;;  %v419_v28 = vld [vmem:[%s3763_s26 + $0x70] sm:$0xff]  ;;  %s3439_s24 = scalar_lea.vmem %s3438_s10, 256  ;;  %p3440_p8 = scmp.lt.s32.totalorder %s1915_s20, %s3438_s10 }
 0x2d1   : > { %3353 = vpow2.f32 %v1202_v30  ;;  %v1163_v41 = vsel %vm1159_vm14, %v1162_v37, %v1158_v36  ;;  %3125 = vmatpush3.bf16.msra.mxu1 %v3124_v7  ;;  %3104 = vmatpush3.bf16.msra.mxu0 %v3103_v10  ;;  %v3130_v22 = vpack.c.bf16 %v432_v21, %v431_v20  ;;  %v3109_v26 = vpack.c.bf16 %v418_v23, %v417_v11  ;;  %v420_v17 = vld [vmem:[%s3763_s26 + $0x78] sm:$0xff]  ;;  %v435_v29 = vld [vmem:[%s3763_s26 + $0xf0] sm:$0xff]  ;;  %v445_v5 = vld [vmem:[%s3763_s26 + $0x140] sm:$0xff]  ;;  %p3441_p10 = scmp.lt.s32.totalorder %s3439_s24, %s3433_s27 }
 0x2d2   : > { %3355 = vpow2.f32 %v1204_v24  ;;  %v1168_v51 = vsel %vm1164_vm15, %v1167_v42, %v1163_v41  ;;  %3126 = vmatprep.subr.bf16.mxu1 %v3544_v0  ;;  %3105 = vmatprep.subr.bf16.mxu0 %v3544_v0  ;;  %v3133_v19 = vpack.c.bf16 %v434_v12, %v433_v25  ;;  %v436_v30 = vld [vmem:[%s3763_s26 + $0xf8] sm:$0xff]  ;;  %v3112_v24 = vpack.c.bf16 %v420_v17, %v419_v28  ;;  %v453_v42 = vld [vmem:[%s3763_s26 + $0x180] sm:$0xff]  ;;  %v446_v6 = vld [vmem:[%s3763_s26 + $0x148] sm:$0xff] }
 0x2d3   : > { %3357 = vpow2.f32 %v1206_v27  ;;  %vm1169_vm8 = vcmp.lt.s32.totalorder %v1127_v47, %v1168_v51  ;;  %v3136_v27 = vpack.c.bf16 %v436_v30, %v435_v29  ;;  %v440_v47 = vld [vmem:[%s3763_s26 + $0x118] sm:$0xff]  ;;  %v461_v8 = vld [vmem:[%s3763_s26 + $0x1c0] sm:$0xff]  ;;  %v462_v9 = vld [vmem:[%s3763_s26 + $0x1c8] sm:$0xff]  ;;  %v3151_v10 = vpack.c.bf16 %v446_v6, %v445_v5  ;;  %p3442_p12 = por %p3441_p10, %p3440_p8 }
 0x2d4   : > { %3359 = vpow2.f32 %v1208_v33  ;;  %v3547_v33 = vmov 1966171168   ;;  %v456_v51 = vld [vmem:[%s3763_s26 + $0x198] sm:$0xff]  ;;  %v447_v13 = vld [vmem:[%s3763_s26 + $0x150] sm:$0xff]  ;;  %v449_v20 = vld [vmem:[%s3763_s26 + $0x160] sm:$0xff] }
 0x2d5   : > { %3128 = vmatpush3.bf16.msra.mxu1 %v3127_v15  ;;  %3107 = vmatpush3.bf16.msra.mxu0 %v3106_v18  ;;  %v1242_v34 = vunpack.c.l.s4 %v3547_v33  ;;  %v448_v14 = vld [vmem:[%s3763_s26 + $0x158] sm:$0xff]  ;;  %v3175_v15 = vpack.c.bf16 %v462_v9, %v461_v8  ;;  %v463_v16 = vld [vmem:[%s3763_s26 + $0x1d0] sm:$0xff]  ;;  %v450_v21 = vld [vmem:[%s3763_s26 + $0x168] sm:$0xff]  ;;  %p3443_p0 = pnand %p3442_p12, %p3436_p13 }
 0x2d6   : > { %v3346_v38 = vpop.eup %3345  ;;  %3129 = vmatprep.subr.bf16.mxu1 %v3544_v0  ;;  %3108 = vmatprep.subr.bf16.mxu0 %v3544_v0  ;;  %v464_v54 = vld [vmem:[%s3763_s26 + $0x1d8] sm:$0xff]  ;;  %v3154_v18 = vpack.c.bf16 %v448_v14, %v447_v13  ;;  %v465_v11 = vld [vmem:[%s3763_s26 + $0x1e0] sm:$0xff]  ;;  %v466_v23 = vld [vmem:[%s3763_s26 + $0x1e8] sm:$0xff]  ;;  %v3157_v25 = vpack.c.bf16 %v450_v21, %v449_v20 }
 0x2d7   : > { %v1243_v35 = vunpack.c.0.s8 %v1242_v34  ;;  %v452_v12 = vld [vmem:[%s3763_s26 + $0x178] sm:$0xff]  ;;  %v3181_v28 = vpack.c.bf16 %v466_v23, %v465_v11  ;;  %v467_v17 = vld [vmem:[%s3763_s26 + $0x1f0] sm:$0xff]  ;;  %v469_v30 = vld [vmem:[%s3763_s26 + $0x200] sm:$0xff] }
 0x2d8   : > { %v3348_v39 = vpop.eup %3347  ;;  %v496_v5 = vld [vmem:[%s3763_s26 + $0x2d8] sm:$0xff]  ;;  %v482_v8 = vld [vmem:[%s3763_s26 + $0x268] sm:$0xff]  ;;  %v499_v20 = vld [vmem:[%s3763_s26 + $0x2f0] sm:$0xff] }
 0x2d9   : > { %v3350_v40 = vpop.eup %3349  ;;  %v1218_v43 = vrot.slane %v3348_v39, 7  ;;  %3131 = vmatpush3.bf16.msra.mxu1 %v3130_v22  ;;  %3110 = vmatpush3.bf16.msra.mxu0 %v3109_v26  ;;  %v4131_v36 = vsub.s32 %v1243_v35, %v4055_v63  ;;  %v437_v39 = vld [vmem:[%s3763_s26 + $0x100] sm:$0xff]  ;;  %v3178_v22 = vpack.c.bf16 %v464_v54, %v463_v16  ;;  %v451_v26 = vld [vmem:[%s3763_s26 + $0x170] sm:$0xff]  ;;  %v498_v13 = vld [vmem:[%s3763_s26 + $0x2e8] sm:$0xff] }
 0x2da   : > { %v3352_v44 = vpop.eup %3351  ;;  %v1220_v45 = vrot.slane %v3350_v40, 6  ;;  %3132 = vmatprep.subr.bf16.mxu1 %v3544_v0  ;;  %3111 = vmatprep.subr.bf16.mxu0 %v3544_v0  ;;  %v438_v40 = vld [vmem:[%s3763_s26 + $0x108] sm:$0xff]  ;;  %v3160_v29 = vpack.c.bf16 %v452_v12, %v451_v26  ;;  %v471_v35 = vld [vmem:[%s3763_s26 + $0x210] sm:$0xff]  ;;  %v484_v54 = vld [vmem:[%s3763_s26 + $0x278] sm:$0xff] }
 0x2db   : > { %v3354_v46 = vpop.eup %3353  ;;  %v1219_v48 = vsel %vm1103_vm1, %v1218_v43, %v3346_v38  ;;  %v1222_v49 = vrot.slane %v3352_v44, 5  ;;  %v454_v43 = vld [vmem:[%s3763_s26 + $0x188] sm:$0xff]  ;;  %v3139_v63 = vpack.c.bf16 %v438_v40, %v437_v39  ;;  %v483_v16 = vld [vmem:[%s3763_s26 + $0x270] sm:$0xff]  ;;  %v500_v21 = vld [vmem:[%s3763_s26 + $0x2f8] sm:$0xff] }
 0x2dc   : > { %v3356_v50 = vpop.eup %3355  ;;  %v1221_v52 = vsel %vm1106_vm2, %v1220_v45, %v1219_v48  ;;  %v1224_v53 = vrot.slane %v3354_v46, 4  ;;  %v439_v46 = vld [vmem:[%s3763_s26 + $0x110] sm:$0xff]  ;;  %v3163_v48 = vpack.c.bf16 %v454_v43, %v453_v42  ;;  %v488_v42 = vld [vmem:[%s3763_s26 + $0x298] sm:$0xff]  ;;  %v501_v11 = vld [vmem:[%s3763_s26 + $0x300] sm:$0xff] }
 0x2dd   : > { %v3358_v55 = vpop.eup %3357  ;;  %v1223_v56 = vsel %vm1109_vm3, %v1222_v49, %v1221_v52  ;;  %v1226_v57 = vrot.slane %v3356_v50, 3  ;;  %3134 = vmatpush3.bf16.msra.mxu1 %v3133_v19  ;;  %3113 = vmatpush3.bf16.msra.mxu0 %v3112_v24  ;;  %v455_v50 = vld [vmem:[%s3763_s26 + $0x190] sm:$0xff]  ;;  %v3142_v52 = vpack.c.bf16 %v440_v47, %v439_v46  ;;  %v468_v19 = vld [vmem:[%s3763_s26 + $0x1f8] sm:$0xff]  ;;  %v470_v24 = vld [vmem:[%s3763_s26 + $0x208] sm:$0xff] }
 0x2de   : > { %v3360_v58 = vpop.eup %3359  ;;  %v1225_v59 = vsel %vm1112_vm4, %v1224_v53, %v1223_v56  ;;  %v1228_v60 = vrot.slane %v3358_v55, 2  ;;  %3135 = vmatprep.subr.bf16.mxu1 %v3544_v0  ;;  %3138 = vmatprep.subr.bf16.mxu0 %v3544_v0  ;;  %v441_v53 = vld [vmem:[%s3763_s26 + $0x120] sm:$0xff]  ;;  %v442_v55 = vld [vmem:[%s3763_s26 + $0x128] sm:$0xff]  ;;  %v3166_v56 = vpack.c.bf16 %v456_v51, %v455_v50  ;;  %v3187_v33 = vpack.c.bf16 %v470_v24, %v469_v30  ;;  %v476_v50 = vld [vmem:[%s3763_s26 + $0x238] sm:$0xff] }
 0x2df   : > { %v1227_v61 = vsel %vm1115_vm5, %v1226_v57, %v1225_v59  ;;  %v1230_v62 = vrot.slane %v3360_v58, 1  ;;  %v457_v57 = vld [vmem:[%s3763_s26 + $0x1a0] sm:$0xff]  ;;  %v458_v58 = vld [vmem:[%s3763_s26 + $0x1a8] sm:$0xff]  ;;  %v3145_v59 = vpack.c.bf16 %v442_v55, %v441_v53  ;;  %v492_v53 = vld [vmem:[%s3763_s26 + $0x2b8] sm:$0xff] }
 0x2e0   : > { %v1229_v2 = vsel %vm1118_vm6, %v1228_v60, %v1227_v61  ;;  %v443_v60 = vld [vmem:[%s3763_s26 + $0x130] sm:$0xff]  ;;  %v444_v61 = vld [vmem:[%s3763_s26 + $0x138] sm:$0xff]  ;;  %v489_v46 = vld [vmem:[%s3763_s26 + $0x2a0] sm:$0xff] }
 0x2e1   : > { %v1231_v3 = vsel %vm1121_vm7, %v1230_v62, %v1229_v2  ;;  %3137 = vmatpush3.bf16.msra.mxu1 %v3136_v27  ;;  %v3169_v62 = vpack.c.bf16 %v458_v58, %v457_v57  ;;  %v459_v2 = vld [vmem:[%s3763_s26 + $0x1b0] sm:$0xff]  ;;  %v3184_v27 = vpack.c.bf16 %v468_v19, %v467_v17  ;;  %v490_v47 = vld [vmem:[%s3763_s26 + $0x2a8] sm:$0xff]  ;;  %v517_v12 = vld [vmem:[%s3763_s26 + $0x380] sm:$0xff] }
 0x2e2   : > { %v1233_v4 = vsel %vm1169_vm8, %v1231_v3, 0.0  ;;  %3162 = vmatprep.subr.bf16.mxu1 %v3544_v0  ;;  %v460_v3 = vld [vmem:[%s3763_s26 + $0x1b8] sm:$0xff]  ;;  %v3217_v51 = vpack.c.bf16 %v490_v47, %v489_v46  ;;  %v478_v57 = vld [vmem:[%s3763_s26 + $0x248] sm:$0xff] }
 0x2e3   : > { %1234 = vadd.xlane.f32.xlu0 %v1233_v4  ;;  %v3172_v7 = vpack.c.bf16 %v460_v3, %v459_v2  ;;  %v480_v2 = vld [vmem:[%s3763_s26 + $0x258] sm:$0xff]  ;;  %v502_v23 = vld [vmem:[%s3763_s26 + $0x308] sm:$0xff] }
 0x2e4   : > { %v3235_v17 = vpack.c.bf16 %v502_v23, %v501_v11  ;;  %v504_v30 = vld [vmem:[%s3763_s26 + $0x318] sm:$0xff]  ;;  %v510_v46 = vld [vmem:[%s3763_s26 + $0x348] sm:$0xff] }
 0x370   : > { %v1235_v31 = vpop.xlane.xlu0 %1234 }
 0x371   : > { %v1236_v32 = vmax.f32 %v1235_v31, 1e-05  ;;  %v485_v31 = vld [vmem:[%s3763_s26 + $0x280] sm:$0xff] }
 0x373   : > { %3361 = vrcp.f32 %v1236_v32  ;;  %v486_v32 = vld [vmem:[%s3763_s26 + $0x288] sm:$0xff] }
 0x374   : > { %v3211_v39 = vpack.c.bf16 %v486_v32, %v485_v31  ;;  %v519_v31 = vld [vmem:[%s3763_s26 + $0x390] sm:$0xff]  ;;  %v520_v32 = vld [vmem:[%s3763_s26 + $0x398] sm:$0xff] }
 0x37d   : > { %v3362_v37 = vpop.eup %3361 }
 0x37e   : > { %v4133_v38 = vmul.f32 %v3362_v37, %v1233_v4  ;;  %v3148_v4 = vpack.c.bf16 %v444_v61, %v443_v60  ;;  %v472_v37 = vld [vmem:[%s3763_s26 + $0x218] sm:$0xff]  ;;  %v494_v60 = vld [vmem:[%s3763_s26 + $0x2c8] sm:$0xff] }
 0x37f   : > { %v3190_v43 = vpack.c.bf16 %v472_v37, %v471_v35  ;;  %v3262_v35 = vpack.c.bf16 %v520_v32, %v519_v31  ;;  %v521_v37 = vld [vmem:[%s3763_s26 + $0x3a0] sm:$0xff] }
 0x380   : > { %v1247_v41 = vrot.slane %v4133_v38, %v4131_v36  ;;  %1881 = vst [vmem:[%s4143_s22] sm:$0xff] %v4133_v38  ;;  %v1240_v14 = vcombine.high %v4133_v38, %v4133_v38  ;;  %v3208_v38 = vpack.c.bf16 %v484_v54, %v483_v16 }
 0x382   : > { %v4148_v44 = vrot.slane %v1247_v41, %v4131_v36  ;;  %v1255_v45 = vcombine.high %v1247_v41, %v1247_v41  ;;  %v487_v41 = vld [vmem:[%s3763_s26 + $0x290] sm:$0xff] }
 0x384   : > { %2651 = vmatmul.mubr.f32.vlgmr.msra.gmra.mrb[8].mxu0 %v4148_v44  ;;  %v4154_v49 = vrot.slane %v1255_v45, %v4131_v36  ;;  %v1285_v34 = vcombine.high %v4148_v44, %v4148_v44  ;;  %v474_v44 = vld [vmem:[%s3763_s26 + $0x228] sm:$0xff]  ;;  %v3214_v45 = vpack.c.bf16 %v488_v42, %v487_v41  ;;  %v507_v41 = vld [vmem:[%s3763_s26 + $0x330] sm:$0xff]  ;;  %v508_v42 = vld [vmem:[%s3763_s26 + $0x338] sm:$0xff] }
 0x385   : > { %3140 = vmatpush3.bf16.msra.mxu0 %v3139_v63  ;;  %2720 = vmatprep.mubr.msk.f32.mxu0 %vm3545_vm0, %v3546_v1  ;;  %v473_v63 = vld [vmem:[%s3763_s26 + $0x220] sm:$0xff] }
 0x386   : > { %2686 = vmatmul.mubr.f32.vlgmr.msra.gmra.mrb[8].mxu1 %v4154_v49  ;;  %3141 = vmatprep.subr.bf16.mxu0 %v3544_v0  ;;  %v1287_v40 = vcombine.high %v4154_v49, %v4154_v49  ;;  %v475_v49 = vld [vmem:[%s3763_s26 + $0x230] sm:$0xff] }
 0x387   : > { %3164 = vmatpush3.bf16.msra.mxu1 %v3163_v48  ;;  %2755 = vmatprep.mubr.msk.f32.mxu1 %vm3545_vm0, %v3546_v1  ;;  %v3193_v48 = vpack.c.bf16 %v474_v44, %v473_v63  ;;  %v3196_v55 = vpack.c.bf16 %v476_v50, %v475_v49  ;;  %v524_v63 = vld [vmem:[%s3763_s26 + $0x3b8] sm:$0xff]  ;;  %v3244_v44 = vpack.c.bf16 %v508_v42, %v507_v41  ;;  %v526_v49 = vld [vmem:[%s3763_s26 + $0x3c8] sm:$0xff] }
 0x388   : > { %3165 = vmatprep.subr.bf16.mxu1 %v3544_v0 }
 0x389   : > { %3143 = vmatpush3.bf16.msra.mxu0 %v3142_v52  ;;  %v491_v52 = vld [vmem:[%s3763_s26 + $0x2b0] sm:$0xff] }
 0x38a   : > { %3144 = vmatprep.subr.bf16.mxu0 %v3544_v0  ;;  %v3220_v58 = vpack.c.bf16 %v492_v53, %v491_v52  ;;  %v512_v52 = vld [vmem:[%s3763_s26 + $0x358] sm:$0xff] }
 0x38b   : > { %3167 = vmatpush3.bf16.msra.mxu1 %v3166_v56  ;;  %v477_v56 = vld [vmem:[%s3763_s26 + $0x240] sm:$0xff] }
 0x38c   : > { %3168 = vmatprep.subr.bf16.mxu1 %v3544_v0  ;;  %v3199_v61 = vpack.c.bf16 %v478_v57, %v477_v56  ;;  %v528_v56 = vld [vmem:[%s3763_s26 + $0x3d8] sm:$0xff] }
 0x38d   : > { %3146 = vmatpush3.bf16.msra.mxu0 %v3145_v59  ;;  %v493_v59 = vld [vmem:[%s3763_s26 + $0x2c0] sm:$0xff] }
 0x38e   : > { %3147 = vmatprep.subr.bf16.mxu0 %v3544_v0  ;;  %v3223_v3 = vpack.c.bf16 %v494_v60, %v493_v59  ;;  %v514_v59 = vld [vmem:[%s3763_s26 + $0x368] sm:$0xff] }
 0x38f   : > { %3170 = vmatpush3.bf16.msra.mxu1 %v3169_v62  ;;  %v479_v62 = vld [vmem:[%s3763_s26 + $0x250] sm:$0xff] }
 0x390   : > { %3171 = vmatprep.subr.bf16.mxu1 %v3544_v0  ;;  %v3202_v6 = vpack.c.bf16 %v480_v2, %v479_v62  ;;  %v530_v62 = vld [vmem:[%s3763_s26 + $0x3e8] sm:$0xff] }
 0x391   : > { %3149 = vmatpush3.bf16.msra.mxu0 %v3148_v4  ;;  %v495_v4 = vld [vmem:[%s3763_s26 + $0x2d0] sm:$0xff] }
 0x392   : > { %3150 = vmatprep.subr.bf16.mxu0 %v3544_v0  ;;  %v3226_v9 = vpack.c.bf16 %v496_v5, %v495_v4  ;;  %v516_v4 = vld [vmem:[%s3763_s26 + $0x378] sm:$0xff] }
 0x393   : > { %3173 = vmatpush3.bf16.msra.mxu1 %v3172_v7  ;;  %v481_v7 = vld [vmem:[%s3763_s26 + $0x260] sm:$0xff] }
 0x394   : > { %3174 = vmatprep.subr.bf16.mxu1 %v3544_v0 }
 0x395   : > { %3152 = vmatpush3.bf16.msra.mxu0 %v3151_v10  ;;  %v497_v10 = vld [vmem:[%s3763_s26 + $0x2e0] sm:$0xff] }
 0x396   : > { %3153 = vmatprep.subr.bf16.mxu0 %v3544_v0 }
 0x397   : > { %3176 = vmatpush3.bf16.msra.mxu1 %v3175_v15  ;;  %v3205_v15 = vpack.c.bf16 %v482_v8, %v481_v7  ;;  %v532_v7 = vld [vmem:[%s3763_s26 + $0x3f8] sm:$0xff] }
 0x398   : > { %3177 = vmatprep.subr.bf16.mxu1 %v3544_v0 }
 0x399   : > { %3155 = vmatpush3.bf16.msra.mxu0 %v3154_v18  ;;  %v3229_v18 = vpack.c.bf16 %v498_v13, %v497_v10 }
 0x39a   : > { %3156 = vmatprep.subr.bf16.mxu0 %v3544_v0 }
 0x39b   : > { %3179 = vmatpush3.bf16.msra.mxu1 %v3178_v22  ;;  %v1254_v22 = vrot.slane %v1240_v14, %v4131_v36 }
 0x39c   : > { %3180 = vmatprep.subr.bf16.mxu1 %v3544_v0 }
 0x39d   : > { %3158 = vmatpush3.bf16.msra.mxu0 %v3157_v25  ;;  %v3232_v25 = vpack.c.bf16 %v500_v21, %v499_v20  ;;  %v1256_v26 = vcombine.high %v1254_v22, %v1254_v22  ;;  %v4265_v19 = vrot.slane %v1254_v22, %v4131_v36 }
 0x39e   : > { %3159 = vmatprep.subr.bf16.mxu0 %v3544_v0 }
 0x39f   : > { %3182 = vmatpush3.bf16.msra.mxu1 %v3181_v28  ;;  %v518_v28 = vld [vmem:[%s3763_s26 + $0x388] sm:$0xff]  ;;  %v1286_v10 = vcombine.high %v4265_v19, %v4265_v19 }
 0x3a0   : > { %3183 = vmatprep.subr.bf16.mxu1 %v3544_v0  ;;  %v3259_v24 = vpack.c.bf16 %v518_v28, %v517_v12 }
 0x3a1   : > { %3161 = vmatpush3.bf16.msra.mxu0 %v3160_v29  ;;  %v503_v29 = vld [vmem:[%s3763_s26 + $0x310] sm:$0xff] }
 0x3a2   : > { %3186 = vmatprep.subr.bf16.mxu0 %v3544_v0 }
 0x3a3   : > { %3185 = vmatpush3.bf16.msra.mxu1 %v3184_v27  ;;  %v4272_v27 = vrot.slane %v1256_v26, %v4131_v36  ;;  %v506_v36 = vld [vmem:[%s3763_s26 + $0x328] sm:$0xff] }
 0x3a4   : > { %2721 = vmatmul.mubr.f32.vlgmr.msra.gmra.mrb[10].mxu0 %v1285_v34  ;;  %3210 = vmatprep.subr.bf16.mxu1 %v3544_v0  ;;  %v505_v34 = vld [vmem:[%s3763_s26 + $0x320] sm:$0xff] }
 0x3a5   : > { %3188 = vmatpush3.bf16.msra.mxu0 %v3187_v33  ;;  %2790 = vmatprep.mubr.msk.f32.mxu0 %vm3545_vm0, %v3546_v1  ;;  %v3238_v33 = vpack.c.bf16 %v504_v30, %v503_v29  ;;  %v1288_v13 = vcombine.high %v4272_v27, %v4272_v27 }
 0x3a6   : > { %2756 = vmatmul.mubr.f32.vlgmr.msra.gmra.mrb[10].mxu1 %v1287_v40  ;;  %3189 = vmatprep.subr.bf16.mxu0 %v3544_v0  ;;  %v3241_v40 = vpack.c.bf16 %v506_v36, %v505_v34 }
 0x3a7   : > { %3212 = vmatpush3.bf16.msra.mxu1 %v3211_v39  ;;  %2825 = vmatprep.mubr.msk.f32.mxu1 %vm3545_vm0, %v3546_v1  ;;  %v522_v39 = vld [vmem:[%s3763_s26 + $0x3a8] sm:$0xff] }
 0x3a8   : > { %3213 = vmatprep.subr.bf16.mxu1 %v3544_v0 }
 0x3a9   : > { %3191 = vmatpush3.bf16.msra.mxu0 %v3190_v43  ;;  %v3265_v43 = vpack.c.bf16 %v522_v39, %v521_v37 }
 0x3aa   : > { %3192 = vmatprep.subr.bf16.mxu0 %v3544_v0 }
 0x3ab   : > { %3215 = vmatpush3.bf16.msra.mxu1 %v3214_v45  ;;  %v509_v45 = vld [vmem:[%s3763_s26 + $0x340] sm:$0xff] }
 0x3ac   : > { %3216 = vmatprep.subr.bf16.mxu1 %v3544_v0  ;;  %v3247_v50 = vpack.c.bf16 %v510_v46, %v509_v45 }
 0x3ad   : > { %3194 = vmatpush3.bf16.msra.mxu0 %v3193_v48  ;;  %v525_v48 = vld [vmem:[%s3763_s26 + $0x3c0] sm:$0xff] }
 0x3ae   : > { %3195 = vmatprep.subr.bf16.mxu0 %v3544_v0  ;;  %v3271_v53 = vpack.c.bf16 %v526_v49, %v525_v48 }
 0x3af   : > { %3218 = vmatpush3.bf16.msra.mxu1 %v3217_v51  ;;  %v511_v51 = vld [vmem:[%s3763_s26 + $0x350] sm:$0xff] }
 0x3b0   : > { %3219 = vmatprep.subr.bf16.mxu1 %v3544_v0  ;;  %v3250_v57 = vpack.c.bf16 %v512_v52, %v511_v51 }
 0x3b1   : > { %3197 = vmatpush3.bf16.msra.mxu0 %v3196_v55  ;;  %v527_v55 = vld [vmem:[%s3763_s26 + $0x3d0] sm:$0xff] }
 0x3b2   : > { %3198 = vmatprep.subr.bf16.mxu0 %v3544_v0  ;;  %v3274_v60 = vpack.c.bf16 %v528_v56, %v527_v55 }
 0x3b3   : > { %3221 = vmatpush3.bf16.msra.mxu1 %v3220_v58  ;;  %v513_v58 = vld [vmem:[%s3763_s26 + $0x360] sm:$0xff] }
 0x3b4   : > { %3222 = vmatprep.subr.bf16.mxu1 %v3544_v0  ;;  %v3253_v2 = vpack.c.bf16 %v514_v59, %v513_v58 }
 0x3b5   : > { %3200 = vmatpush3.bf16.msra.mxu0 %v3199_v61  ;;  %v529_v61 = vld [vmem:[%s3763_s26 + $0x3e0] sm:$0xff] }
 0x3b6   : > { %3201 = vmatprep.subr.bf16.mxu0 %v3544_v0  ;;  %v3277_v5 = vpack.c.bf16 %v530_v62, %v529_v61 }
 0x3b7   : > { %3224 = vmatpush3.bf16.msra.mxu1 %v3223_v3  ;;  %v515_v3 = vld [vmem:[%s3763_s26 + $0x370] sm:$0xff] }
 0x3b8   : > { %3225 = vmatprep.subr.bf16.mxu1 %v3544_v0  ;;  %v3256_v8 = vpack.c.bf16 %v516_v4, %v515_v3 }
 0x3b9   : > { %3203 = vmatpush3.bf16.msra.mxu0 %v3202_v6  ;;  %v531_v6 = vld [vmem:[%s3763_s26 + $0x3f0] sm:$0xff] }
 0x3ba   : > { %3204 = vmatprep.subr.bf16.mxu0 %v3544_v0 }
 0x3bb   : > { %3227 = vmatpush3.bf16.msra.mxu1 %v3226_v9  ;;  %v3280_v9 = vpack.c.bf16 %v532_v7, %v531_v6 }
 0x3bc   : > { %3228 = vmatprep.subr.bf16.mxu1 %v3544_v0 }
 0x3bd   : > { %3206 = vmatpush3.bf16.msra.mxu0 %v3205_v15 }
 0x3be   : > { %3207 = vmatprep.subr.bf16.mxu0 %v3544_v0 }
 0x3bf   : > { %3230 = vmatpush3.bf16.msra.mxu1 %v3229_v18 }
 0x3c0   : > { %3231 = vmatprep.subr.bf16.mxu1 %v3544_v0 }
 0x3c1   : > { %3209 = vmatpush3.bf16.msra.mxu0 %v3208_v38 }
 0x3c2   : > { %3234 = vmatprep.subr.bf16.mxu0 %v3544_v0 }
 0x3c3   : > { %3233 = vmatpush3.bf16.msra.mxu1 %v3232_v25 }
 0x3c4   : > { %2791 = vmatmul.mubr.f32.vlgmr.msra.gmra.mrb[12].mxu0 %v4265_v19  ;;  %3258 = vmatprep.subr.bf16.mxu1 %v3544_v0 }
 0x3c5   : > { %3236 = vmatpush3.bf16.msra.mxu0 %v3235_v17  ;;  %2860 = vmatprep.mubr.msk.f32.mxu0 %vm3545_vm0, %v3546_v1 }
 0x3c6   : > { %2826 = vmatmul.mubr.f32.vlgmr.msra.gmra.mrb[12].mxu1 %v4272_v27  ;;  %3237 = vmatprep.subr.bf16.mxu0 %v3544_v0 }
 0x3c7   : > { %3260 = vmatpush3.bf16.msra.mxu1 %v3259_v24  ;;  %2895 = vmatprep.mubr.msk.f32.mxu1 %vm3545_vm0, %v3546_v1  ;;  %v523_v1 = vld [vmem:[%s3763_s26 + $0x3b0] sm:$0xff]  ;;  %s2058_s26 = sshll.u32 %s3613_s0, 7 }
 0x3c8   : > { %3261 = vmatprep.subr.bf16.mxu1 %v3544_v0  ;;  %v3268_v47 = vpack.c.bf16 %v524_v63, %v523_v1  ;;  %s4330_s18 = scalar_lea.hbm %s4414_s5, %s2058_s26 }
 0x3c9   : > { %3239 = vmatpush3.bf16.msra.mxu0 %v3238_v33 }
 0x3ca   : > { %3240 = vmatprep.subr.bf16.mxu0 %v3544_v0 }
 0x3cb   : > { %3263 = vmatpush3.bf16.msra.mxu1 %v3262_v35 }
 0x3cc   : > { %3264 = vmatprep.subr.bf16.mxu1 %v3544_v0 }
 0x3cd   : > { %3242 = vmatpush3.bf16.msra.mxu0 %v3241_v40 }
 0x3ce   : > { %3243 = vmatprep.subr.bf16.mxu0 %v3544_v0 }
 0x3cf   : > { %3266 = vmatpush3.bf16.msra.mxu1 %v3265_v43 }
 0x3d0   : > { %3267 = vmatprep.subr.bf16.mxu1 %v3544_v0 }
 0x3d1   : > { %3245 = vmatpush3.bf16.msra.mxu0 %v3244_v44 }
 0x3d2   : > { %3246 = vmatprep.subr.bf16.mxu0 %v3544_v0 }
 0x3d3   : > { %3269 = vmatpush3.bf16.msra.mxu1 %v3268_v47 }
 0x3d4   : > { %3270 = vmatprep.subr.bf16.mxu1 %v3544_v0 }
 0x3d5   : > { %3248 = vmatpush3.bf16.msra.mxu0 %v3247_v50 }
 0x3d6   : > { %3249 = vmatprep.subr.bf16.mxu0 %v3544_v0 }
 0x3d7   : > { %3272 = vmatpush3.bf16.msra.mxu1 %v3271_v53 }
 0x3d8   : > { %3273 = vmatprep.subr.bf16.mxu1 %v3544_v0 }
 0x3d9   : > { %3251 = vmatpush3.bf16.msra.mxu0 %v3250_v57 }
 0x3da   : > { %3252 = vmatprep.subr.bf16.mxu0 %v3544_v0 }
 0x3db   : > { %3275 = vmatpush3.bf16.msra.mxu1 %v3274_v60 }
 0x3dc   : > { %3276 = vmatprep.subr.bf16.mxu1 %v3544_v0 }
 0x3dd   : > { %3254 = vmatpush3.bf16.msra.mxu0 %v3253_v2 }
 0x3de   : > { %3255 = vmatprep.subr.bf16.mxu0 %v3544_v0 }
 0x3df   : > { %3278 = vmatpush3.bf16.msra.mxu1 %v3277_v5 }
 0x3e0   : > { %3279 = vmatprep.subr.bf16.mxu1 %v3544_v0 }
 0x3e1   : > { %3257 = vmatpush3.bf16.msra.mxu0 %v3256_v8 }
 0x3e3   : > { %3281 = vmatpush3.bf16.msra.mxu1 %v3280_v9 }
 0x3e4   : > { %2861 = vmatmul.mubr.f32.vlgmr.msra.gmra.mrb[14].mxu0 %v1286_v10 }
 0x3e6   : > { %2896 = vmatmul.mubr.f32.vlgmr.msra.gmra.mrb[14].mxu1 %v1288_v13 }
 0x3e7   : > { %3446 = shalt.err (!%p3443_p0)
}
 0x3e8   : > { %s3447_s16 = scalar_lea.hbm %s4330_s18, 128  ;;  %s3451_s19 = scalar_lea.hbm %s4414_s5, 256 }
 0x3e9   : > { %p3448_p6 = scmp.ne.s32.totalorder %s4330_s18, %s3447_s16  ;;  %p3452_p5 = scmp.lt.u32.totalorder %s4330_s18, %s4414_s5 }
 0x3ea   : > { %p3453_p7 = scmp.lt.u32.totalorder %s3451_s19, %s3447_s16  ;;  %p3455_p2 = scmp.lt.u32.totalorder %s3447_s16, %s4330_s18 }
 0x3eb   : > { %p3449_p11 = pnand %p3448_p6, %p4424_p4 }
 0x3ec   : > { %p3454_p9 = por %p3453_p7, %p3452_p5 }
 0x3ed   : > { %p3450_p3 = pneg %p3449_p11 }
 0x3ee   : > { %p3456_p1 = por %p3455_p2, %p3454_p9 }
 0x3f0   : > { %p3457_p13 = pnand %p3456_p1, %p3450_p3 }
 0x3f2   : > { %3460 = shalt.err (!%p3457_p13)
}
 0x3f3   : > { %3287 = dma.vmem_to_hbm [thread:$0]  (%p4424_p4), %s1915_s20, 128, %s4330_s18, %s1888_s25  }
 0x3f4   : > { %s266_s12 = scalar_lea.vmem [#allocation9], %s2053_s9  ;;  %s4364_s27 = scalar_lea.hbm %s4413_s4, %s2058_s26 }
 0x3f5   : > { %s1901_s18 = sshll.u32 %s266_s12, 4  ;;  %s1883_s9 = scalar_lea.sflag [#allocation6], %s3752_s23  ;;  %s4366_s18 = int_to_ptr.vmem [resolvable:$true] %s1901_s18 }
 0x3f6   : > { %s3461_s17 = scalar_lea.vmem %s4366_s18, 128  ;;  %s3549_s0 = smov [#allocation9]  }
 0x3f7   : > { %p3462_p8 = scmp.ne.s32.totalorder %s4366_s18, %s3461_s17  ;;  %s3465_s10 = sshll.u32 %s3549_s0, 4  ;;  %s3466_s10 = int_to_ptr.vmem [resolvable:$false] %s3465_s10 }
 0x3f8   : > { %s3467_s24 = scalar_lea.vmem %s3466_s10, 256  ;;  %p3468_p0 = scmp.lt.s32.totalorder %s4366_s18, %s3466_s10 }
 0x3f9   : > { %p3463_p10 = pnand %p3462_p8, %p4424_p4  ;;  %p3469_p6 = scmp.lt.s32.totalorder %s3467_s24, %s3461_s17 }
 0x3fb   : > { %p3464_p12 = pneg %p3463_p10  ;;  %p3470_p11 = por %p3469_p6, %p3468_p0 }
 0x3fd   : > { %p3471_p3 = pnand %p3470_p11, %p3464_p12 }
 0x457   : > { %v1363_v0 = vpop.f32.mrb[8].mxu0 }
 0x458   : > { %v2652_v14 = vpop.f32.mrb[9].mxu0 }
 0x459   : > { %v1433_v15 = vpop.f32.mrb[8].mxu1 }
 0x45a   : > { %v1865_v16 = vrot.slane %v1433_v15, 7  ;;  %v2687_v54 = vpop.f32.mrb[9].mxu1 }
 0x45c   : > { %v1866_v18 = vsel %vm1103_vm1, %v1865_v16, %v1363_v0 }
 0x477   : > { %v1503_v20 = vpop.f32.mrb[10].mxu0 }
 0x478   : > { %v1867_v21 = vrot.slane %v1503_v20, 6  ;;  %v2722_v22 = vpop.f32.mrb[11].mxu0 }
 0x479   : > { %v1573_v38 = vpop.f32.mrb[10].mxu1 }
 0x47a   : > { %v1868_v11 = vsel %vm1106_vm2, %v1867_v21, %v1866_v18  ;;  %v1869_v23 = vrot.slane %v1573_v38, 5  ;;  %v2757_v25 = vpop.f32.mrb[11].mxu1 }
 0x47c   : > { %v1870_v26 = vsel %vm1109_vm3, %v1869_v23, %v1868_v11 }
 0x497   : > { %v1643_v12 = vpop.f32.mrb[12].mxu0 }
 0x498   : > { %v1871_v28 = vrot.slane %v1643_v12, 4  ;;  %v2792_v17 = vpop.f32.mrb[13].mxu0 }
 0x499   : > { %v1713_v19 = vpop.f32.mrb[12].mxu1 }
 0x49a   : > { %v1872_v29 = vsel %vm1112_vm4, %v1871_v28, %v1870_v26  ;;  %v1873_v30 = vrot.slane %v1713_v19, 3  ;;  %v2827_v24 = vpop.f32.mrb[13].mxu1 }
 0x49c   : > { %v1874_v27 = vsel %vm1115_vm5, %v1873_v30, %v1872_v29 }
 0x4b7   : > { %v1783_v31 = vpop.f32.mrb[14].mxu0 }
 0x4b8   : > { %v1875_v32 = vrot.slane %v1783_v31, 2  ;;  %v2862_v33 = vpop.f32.mrb[15].mxu0 }
 0x4b9   : > { %v1853_v34 = vpop.f32.mrb[14].mxu1 }
 0x4ba   : > { %v1876_v36 = vsel %vm1118_vm6, %v1875_v32, %v1874_v27  ;;  %v1877_v35 = vrot.slane %v1853_v34, 1  ;;  %v2897_v37 = vpop.f32.mrb[15].mxu1 }
 0x4bc   : > { %v1878_v39 = vsel %vm1121_vm7, %v1877_v35, %v1876_v36 }
 0x4bd   : > { %1880 = vst [vmem:[%s266_s12] sm:$0xff] %v1878_v39 }
 0x4be   : > { %3474 = shalt.err (!%p3471_p3)
}
 0x4bf   : > { %s3475_s23 = scalar_lea.hbm %s4364_s27, 128  ;;  %s3479_s13 = scalar_lea.hbm %s4413_s4, 256 }
 0x4c0   : > { %p3476_p5 = scmp.ne.s32.totalorder %s4364_s27, %s3475_s23  ;;  %p3480_p2 = scmp.lt.u32.totalorder %s4364_s27, %s4413_s4 }
 0x4c1   : > { %p3481_p1 = scmp.lt.u32.totalorder %s3479_s13, %s3475_s23  ;;  %p3483_p8 = scmp.lt.u32.totalorder %s3475_s23, %s4364_s27 }
 0x4c2   : > { %p3477_p7 = pnand %p3476_p5, %p4424_p4 }
 0x4c3   : > { %p3482_p13 = por %p3481_p1, %p3480_p2 }
 0x4c4   : > { %p3478_p9 = pneg %p3477_p7 }
 0x4c5   : > { %p3484_p10 = por %p3483_p8, %p3482_p13 }
 0x4c7   : > { %p3485_p12 = pnand %p3484_p10, %p3478_p9 }
 0x4c9   : > { %3488 = shalt.err (!%p3485_p12)
}
 0x4ca   : > { %3286 = dma.vmem_to_hbm [thread:$0]  (%p4424_p4), %s4366_s18, 128, %s4364_s27, %s1883_s9  }
 0x4cb PF: > { %s1926_s22 = sand.u32 1, %s3525_s28   ;;  %p4425_p0 = scmp.ne.s32.totalorder %s4420_s15, 0 }
 0x4cc   : > { %p4426_p6 = scmp.ge.s32.totalorder %s3537_s6, 2  ;;  %s1927_s21 = scalar_lea.sflag [#allocation6], %s1926_s22 }
 0x4ce   : > { %p3298_p11 = pnand %p4426_p6, %p4425_p0 }
 0x4d0   : > { %3516 = dma.done.wait (!%p3298_p11), %s1927_s21, 128  }
 0x4d1   : > { %3518 = vsyncadd (!%p3298_p11), %s1927_s21, 4294967168  ;;  %s1936_s12 = scalar_lea.sflag [#allocation11], %s1926_s22 }
 0x4d2   : > { %3520 = dma.done.wait (!%p3298_p11), %s1936_s12, 128  }
 0x4d3   : > { %3522 = vsyncadd (!%p3298_p11), %s1936_s12, 4294967168  ;;  %p29_p4 = scmp.ge.s32.totalorder %s3617_s8, 4   ;;  %s4427_s28 = smov %s3529_s29 }
 0x4d4   : > { %s4428_s29 = smov %s3533_s30  ;;  %s4429_s30 = smov %s3629_s11 }
 0x4d5   : > { %s4430_s6 = smov %s3617_s8  ;;  %31 = sbr.rel (!%p29_p4) target bundleno = 21 (0x15), region = 107 }
 0x4dc   :  { %1941 = vsyncpa [#allocation5], 1 }
 0x4dd   :  { %1943 = vsyncpa [#allocation5 + $0x1], 1 }
 0x4de   :  { %1944 = vsyncpa [#allocation8], 1 }
 0x4df   :  { %1946 = vsyncpa [#allocation8 + $0x1], 1 }
 0x4e0   :  { %1947 = vsyncpa [#allocation6], 1 }
 0x4e1   :  { %1949 = vsyncpa [#allocation6 + $0x1], 1 }
 0x4e2   :  { %1950 = vsyncpa [#allocation11], 1 }
 0x4e3   :  { %1952 = vsyncpa [#allocation11 + $0x1], 1 }

</bundles_post_ra>
